<compile_context>
chip_gen: v6e
topology: v6e:2x2x1
jax: 0.10.0
libtpu: 0.0.40
codegen_flags: <defaults>
</compile_context>

<pallas_src>
import jax
import jax.numpy as jnp
from jax import lax
from jax.experimental import pallas as pl
from jax.experimental.pallas import tpu as pltpu

_VMEM_LIMIT = 32 * 1024 * 1024   # <= default scoped VMEM on v6e/v7x, raises v5e


# ----------------------------------------------------------------------------
# Kernel 1: left-matmul + bias   out[co, m] = sum_k wT[co, k] * act[k, m] + b[co]
# (channels-first conv-as-matmul; spatial axis on the lane dimension)
# ----------------------------------------------------------------------------
def _lmatmul_bias_kernel(w_ref, a_ref, b_ref, o_ref):
    a = a_ref[0].astype(jnp.bfloat16)                       # (K, TN)
    acc = jnp.dot(w_ref[...], a, preferred_element_type=jnp.float32)
    acc = acc + b_ref[...]                                  # (Cout, 1) lane splat
    o_ref[0] = acc.astype(o_ref.dtype)


def pallas_lmatmul_bias(w_t, act, bias_col, tn=512, out_dtype=jnp.float32):
    """w_t: (Cout, K), act: (n, K, M), bias_col: (Cout, 1) -> (n, Cout, M)."""
    n, k, m = act.shape
    cout = w_t.shape[0]
    tn = min(tn, m)
    grid = (n, pl.cdiv(m, tn))
    return pl.pallas_call(
        _lmatmul_bias_kernel,
        grid=grid,
        in_specs=[
            pl.BlockSpec((cout, k), lambda i, j: (0, 0)),
            pl.BlockSpec((1, k, tn), lambda i, j: (i, 0, j)),
            pl.BlockSpec((cout, 1), lambda i, j: (0, 0)),
        ],
        out_specs=pl.BlockSpec((1, cout, tn), lambda i, j: (i, 0, j)),
        out_shape=jax.ShapeDtypeStruct((n, cout, m), out_dtype),
        compiler_params=pltpu.CompilerParams(
            dimension_semantics=("parallel", "parallel"),
            vmem_limit_bytes=_VMEM_LIMIT),
    )(w_t.astype(jnp.bfloat16), act, bias_col)


# ----------------------------------------------------------------------------
# Kernel 2: fused ESA tail (folded conv1+conv_f, upsample, add, conv4, gate)
# ----------------------------------------------------------------------------
def _esa_tail_kernel(x_ref, pt_ref, c3_ref, w1f_ref, b1f_ref,
                     w4t_ref, b4_ref, o_ref):
    xt = x_ref[0]                                                   # (C, TN) f32
    cf = jnp.dot(w1f_ref[...], xt.astype(jnp.bfloat16),
                 preferred_element_type=jnp.float32) + b1f_ref[...]  # (F, TN)
    # bilinear upsample of c3 as an interpolation-matrix matmul (no gathers)
    up = jnp.dot(c3_ref[0], pt_ref[...],
                 preferred_element_type=jnp.float32)                 # (F, TN)
    t = (up + cf).astype(jnp.bfloat16)
    c4 = jnp.dot(w4t_ref[...], t,
                 preferred_element_type=jnp.float32) + b4_ref[...]   # (C, TN)
    m = jax.nn.sigmoid(c4)
    o_ref[0] = (xt * m).astype(o_ref.dtype)


def esa_tail(x3, p_t, c3, w1f_t, b1f_col, w4_t, b4_col, tn=512):
    """x3: (n, C, HW), p_t: (s, HW), c3: (n, F, s) -> (n, C, HW) gated output."""
    n, c, hw = x3.shape
    f, s = c3.shape[1], c3.shape[2]
    tn = min(tn, hw)
    grid = (n, pl.cdiv(hw, tn))
    return pl.pallas_call(
        _esa_tail_kernel,
        grid=grid,
        in_specs=[
            pl.BlockSpec((1, c, tn), lambda i, j: (i, 0, j)),
            pl.BlockSpec((s, tn), lambda i, j: (0, j)),
            pl.BlockSpec((1, f, s), lambda i, j: (i, 0, 0)),
            pl.BlockSpec((f, c), lambda i, j: (0, 0)),
            pl.BlockSpec((f, 1), lambda i, j: (0, 0)),
            pl.BlockSpec((c, f), lambda i, j: (0, 0)),
            pl.BlockSpec((c, 1), lambda i, j: (0, 0)),
        ],
        out_specs=pl.BlockSpec((1, c, tn), lambda i, j: (i, 0, j)),
        out_shape=jax.ShapeDtypeStruct((n, c, hw), jnp.float32),
        compiler_params=pltpu.CompilerParams(
            dimension_semantics=("parallel", "parallel"),
            vmem_limit_bytes=_VMEM_LIMIT),
    )(x3, p_t, c3, w1f_t.astype(jnp.bfloat16), b1f_col,
      w4_t.astype(jnp.bfloat16), b4_col)


# ----------------------------------------------------------------------------
# Glue: channels-first im2col (tiny maps) and the bilinear interp matrix
# ----------------------------------------------------------------------------
def im2col_chf(x, kh, kw, stride=1, padding=0):
    """Channels-first im2col: x (n,c,h,w) -> patches (n, kh*kw*c, ho*wo)."""
    # TODO(synk): at large resolutions fuse the im2col into the kernel with
    # row-banded haloed input blocks instead of materializing the patch tensor.
    n, c, h, w = x.shape
    xp = jnp.pad(x, ((0, 0), (0, 0), (padding, padding), (padding, padding)))
    ho = (h + 2 * padding - kh) // stride + 1
    wo = (w + 2 * padding - kw) // stride + 1
    cols = []
    for di in range(kh):
        for dj in range(kw):
            cols.append(xp[:, :, di:di + stride * (ho - 1) + 1:stride,
                                 dj:dj + stride * (wo - 1) + 1:stride])
    patches = jnp.concatenate(cols, axis=1).reshape(n, kh * kw * c, ho * wo)
    return patches, ho, wo


def _bilinear_matrix(out_size, in_size):
    """Dense (out_size, in_size) matrix matching F.interpolate(bilinear,
    align_corners=False)."""
    o = jnp.arange(out_size, dtype=jnp.float32)
    src = jnp.maximum((o + 0.5) * (in_size / out_size) - 0.5, 0.0)
    i0 = jnp.clip(jnp.floor(src).astype(jnp.int32), 0, in_size - 1)
    i1 = jnp.minimum(i0 + 1, in_size - 1)
    w1 = src - i0.astype(jnp.float32)
    w0 = 1.0 - w1
    return (w0[:, None] * jax.nn.one_hot(i0, in_size, dtype=jnp.float32)
            + w1[:, None] * jax.nn.one_hot(i1, in_size, dtype=jnp.float32))


# ----------------------------------------------------------------------------
# ESA forward (Pallas path) -- input and output stay NCHW
# ----------------------------------------------------------------------------
def esa_forward(params, x_nchw):
    p = params
    n, c, h, wd = x_nchw.shape
    f = p["w1"].shape[1]
    hw = h * wd
    x3 = x_nchw.reshape(n, c, hw)

    # conv1 (1x1): channels-first left-matmul; bf16 output (only feeds the
    # 3x3 downsampling branch -- the tail uses the folded conv1*conv_f weight).
    c1_ = pallas_lmatmul_bias(p["w1"].T, x3, p["b1"][:, None],
                              out_dtype=jnp.bfloat16)
    c1_ = c1_.reshape(n, f, h, wd)

    # conv2 : 3x3, stride 2, no padding (im2col glue + left-matmul kernel)
    pat2, h2, w2 = im2col_chf(c1_, 3, 3, stride=2, padding=0)
    c1 = pallas_lmatmul_bias(p["w2"].reshape(9 * f, f).T, pat2,
                             p["b2"][:, None]).reshape(n, f, h2, w2)

    # max_pool2d(kernel=7, stride=3) on the tiny strided map -> plain lax
    v_max = lax.reduce_window(c1, -jnp.inf, lax.max,
                              (1, 1, 7, 7), (1, 1, 3, 3), "VALID")

    # conv3 : 3x3, padding 1
    pat3, hc, wc = im2col_chf(v_max, 3, 3, stride=1, padding=1)
    c3 = pallas_lmatmul_bias(p["w3"].reshape(9 * f, f).T, pat3,
                             p["b3"][:, None]).reshape(n, f, hc * wc)

    # separable bilinear interpolation as one dense transposed matrix (s, H*W)
    p_t = jnp.kron(_bilinear_matrix(h, hc).T, _bilinear_matrix(wd, wc).T)

    # fold conv1 o conv_f (both 1x1): cf = x @ (W1 Wf) + (b1 Wf + bf)
    w1f_t = (p["w1"] @ p["wf"]).T                        # (f, c)
    b1f = p["b1"] @ p["wf"] + p["bf"]                    # (f,)

    # fused tail: conv_f + upsample + add + conv4 + sigmoid + x*m   (NCHW out)
    out = esa_tail(x3, p_t, c3, w1f_t, b1f[:, None],
                   p["w4"].T, p["b4"][:, None])
    return out.reshape(n, c, h, wd)


# ----------------------------------------------------------------------------
# Pure-JAX f32 reference (loose numerical sanity check)
# ----------------------------------------------------------------------------
def esa_reference(params, x_nchw):
    p = params
    x = jnp.transpose(x_nchw, (0, 2, 3, 1))                 # NCHW -> NHWC
    dn = ("NHWC", "HWIO", "NHWC")
    c1_ = jnp.einsum("nhwc,cf->nhwf", x, p["w1"]) + p["b1"]
    c1 = lax.conv_general_dilated(c1_, p["w2"], (2, 2), "VALID",
                                  dimension_numbers=dn) + p["b2"]
    v_max = lax.reduce_window(c1, -jnp.inf, lax.max,
                              (1, 7, 7, 1), (1, 3, 3, 1), "VALID")
    c3 = lax.conv_general_dilated(v_max, p["w3"], (1, 1), [(1, 1), (1, 1)],
                                  dimension_numbers=dn) + p["b3"]
    ry = _bilinear_matrix(x.shape[1], c3.shape[1])
    rx = _bilinear_matrix(x.shape[2], c3.shape[2])
    c3u = jnp.einsum("hy,wx,nyxf->nhwf", ry, rx, c3)
    cf = jnp.einsum("nhwf,fg->nhwg", c1_, p["wf"]) + p["bf"]
    c4 = jnp.einsum("nhwf,fc->nhwc", c3u + cf, p["w4"]) + p["b4"]
    m = jax.nn.sigmoid(c4)
    return jnp.transpose(x * m, (0, 3, 1, 2))


# ----------------------------------------------------------------------------
# Deterministic parameter initialization (synthetic weights)
# ----------------------------------------------------------------------------
def init_params(key, n_feats=52, f=16):
    ks = jax.random.split(key, 10)
    mat = lambda k, ci, co: jax.random.normal(k, (ci, co), jnp.float32) / jnp.sqrt(ci)
    cw = lambda k, ci, co: jax.random.normal(k, (3, 3, ci, co), jnp.float32) / jnp.sqrt(9 * ci)
    vec = lambda k, m: jax.random.normal(k, (m,), jnp.float32) * 0.01
    return {
        "w1": mat(ks[0], n_feats, f), "b1": vec(ks[1], f),
        "wf": mat(ks[2], f, f),       "bf": vec(ks[3], f),
        "w2": cw(ks[4], f, f),        "b2": vec(ks[5], f),
        "w3": cw(ks[6], f, f),        "b3": vec(ks[7], f),
        "w4": mat(ks[8], f, n_feats), "b4": vec(ks[9], n_feats),
    }


# ----------------------------------------------------------------------------
if __name__ == "__main__":
    key = jax.random.PRNGKey(0)
    pkey, xkey = jax.random.split(key)
    n_feats, esa_ch = 52, 16
    params = init_params(pkey, n_feats=n_feats, f=esa_ch)
    # NCHW input like PyTorch; 32x32 so the stride-2 conv + 7/3 max-pool are
    # non-degenerate (c1 = 15x15, pooled = 3x3).
    x = jax.random.normal(xkey, (2, n_feats, 32, 32), jnp.float32)

    out = jax.jit(esa_forward)(params, x)
    jax.block_until_ready(out)

    assert out.shape == x.shape, out.shape
    assert bool(jnp.all(jnp.isfinite(out)))

    ref = jax.jit(esa_reference)(params, x)
    err = float(jnp.max(jnp.abs(out - ref)))
    assert err < 0.2, f"max abs err vs f32 reference: {err}"

    print("KERNEL_OK")
</pallas_src>

<mosaic_0001>
module attributes {stable_mosaic.version = 11 : i64} {
  func.func @_lmatmul_bias_kernel(%arg0: i32, %arg1: i32, %arg2: memref<16x52xbf16, #tpu.memory_space<vmem>>, %arg3: memref<1x52x512xf32, #tpu.memory_space<vmem>>, %arg4: memref<16x1xf32, #tpu.memory_space<vmem>>, %arg5: memref<1x16x512xbf16, #tpu.memory_space<vmem>>) attributes {dimension_semantics = [#tpu.dimension_semantics<parallel>, #tpu.dimension_semantics<parallel>], iteration_bounds = array<i64: 2, 2>, scalar_prefetch = 0 : i64, scratch_operands = 0 : i64, tpu.core_type = #tpu.core_type<tc>, window_params = [{pipeline_mode = #tpu.pipeline_mode<synchronous>, transform_indices = @transform_0, window_bounds = array<i64: 16, 52>}, {transform_indices = @transform_1, window_bounds = array<i64: 1, 52, 512>}, {pipeline_mode = #tpu.pipeline_mode<synchronous>, transform_indices = @transform_2, window_bounds = array<i64: 16, 1>}, {transform_indices = @transform_3, window_bounds = array<i64: 1, 16, 512>}]} {
    %c0 = arith.constant 0 : index
    %c0_0 = arith.constant 0 : index
    %c0_1 = arith.constant 0 : index
    %0 = vector.load %arg3[%c0, %c0_0, %c0_1] : memref<1x52x512xf32, #tpu.memory_space<vmem>>, vector<1x52x512xf32>
    %1 = vector.shape_cast %0 : vector<1x52x512xf32> to vector<52x512xf32>
    %2 = arith.truncf %1 : vector<52x512xf32> to vector<52x512xbf16>
    %c0_2 = arith.constant 0 : index
    %c0_3 = arith.constant 0 : index
    %3 = vector.load %arg2[%c0_2, %c0_3] : memref<16x52xbf16, #tpu.memory_space<vmem>>, vector<16x52xbf16>
    %cst = arith.constant dense<0.000000e+00> : vector<16x512xf32>
    %4 = tpu.matmul %3, %2, %cst {dimension_numbers = #tpu.dot_dimension_numbers<[1], [0], [0], [1], [0, 0, 1, 1], [], []>} : vector<16x52xbf16>, vector<52x512xbf16>, vector<16x512xf32> -> vector<16x512xf32>
    %c0_4 = arith.constant 0 : index
    %c0_5 = arith.constant 0 : index
    %5 = vector.load %arg4[%c0_4, %c0_5] : memref<16x1xf32, #tpu.memory_space<vmem>>, vector<16x1xf32>
    %6 = vector.broadcast %5 : vector<16x1xf32> to vector<16x512xf32>
    %7 = arith.addf %4, %6 : vector<16x512xf32>
    %8 = arith.truncf %7 : vector<16x512xf32> to vector<16x512xbf16>
    %c0_6 = arith.constant 0 : index
    %c0_7 = arith.constant 0 : index
    %c0_8 = arith.constant 0 : index
    %9 = vector.load %arg5[%c0_6, %c0_7, %c0_8] : memref<1x16x512xbf16, #tpu.memory_space<vmem>>, vector<1x16x512xbf16>
    %10 = vector.shape_cast %9 : vector<1x16x512xbf16> to vector<16x512xbf16>
    %11 = vector.shape_cast %8 : vector<16x512xbf16> to vector<1x16x512xbf16>
    tpu.vector_store %arg5[%c0_6, %c0_7, %c0_8], %11 {strides = array<i32>} : memref<1x16x512xbf16, #tpu.memory_space<vmem>>, vector<1x16x512xbf16>,
    return
  }
  func.func @transform_0(%arg0: i32, %arg1: i32) -> (i32, i32) {
    %c0_i32 = arith.constant 0 : i32
    %c0_i32_0 = arith.constant 0 : i32
    %c0_i32_1 = arith.constant 0 : i32
    return %c0_i32, %c0_i32_0 : i32, i32
  }
  func.func @transform_1(%arg0: i32, %arg1: i32) -> (i32, i32, i32) {
    %c0_i32 = arith.constant 0 : i32
    %c0_i32_0 = arith.constant 0 : i32
    return %arg0, %c0_i32, %arg1 : i32, i32, i32
  }
  func.func @transform_2(%arg0: i32, %arg1: i32) -> (i32, i32) {
    %c0_i32 = arith.constant 0 : i32
    %c0_i32_0 = arith.constant 0 : i32
    %c0_i32_1 = arith.constant 0 : i32
    return %c0_i32, %c0_i32_0 : i32, i32
  }
  func.func @transform_3(%arg0: i32, %arg1: i32) -> (i32, i32, i32) {
    %c0_i32 = arith.constant 0 : i32
    %c0_i32_0 = arith.constant 0 : i32
    return %arg0, %c0_i32, %arg1 : i32, i32, i32
  }
}

module attributes {stable_mosaic.version = 11 : i64} {
  func.func @_lmatmul_bias_kernel(%arg0: i32, %arg1: i32, %arg2: memref<16x144xbf16, #tpu.memory_space<vmem>>, %arg3: memref<1x144x225xbf16, #tpu.memory_space<vmem>>, %arg4: memref<16x1xf32, #tpu.memory_space<vmem>>, %arg5: memref<1x16x225xf32, #tpu.memory_space<vmem>>) attributes {dimension_semantics = [#tpu.dimension_semantics<parallel>, #tpu.dimension_semantics<parallel>], iteration_bounds = array<i64: 2, 1>, scalar_prefetch = 0 : i64, scratch_operands = 0 : i64, tpu.core_type = #tpu.core_type<tc>, window_params = [{pipeline_mode = #tpu.pipeline_mode<synchronous>, transform_indices = @transform_0, window_bounds = array<i64: 16, 144>}, {transform_indices = @transform_1, window_bounds = array<i64: 1, 144, 225>}, {pipeline_mode = #tpu.pipeline_mode<synchronous>, transform_indices = @transform_2, window_bounds = array<i64: 16, 1>}, {transform_indices = @transform_3, window_bounds = array<i64: 1, 16, 225>}]} {
    %c0 = arith.constant 0 : index
    %c0_0 = arith.constant 0 : index
    %c0_1 = arith.constant 0 : index
    %0 = vector.load %arg3[%c0, %c0_0, %c0_1] : memref<1x144x225xbf16, #tpu.memory_space<vmem>>, vector<1x144x225xbf16>
    %1 = vector.shape_cast %0 : vector<1x144x225xbf16> to vector<144x225xbf16>
    %c0_2 = arith.constant 0 : index
    %c0_3 = arith.constant 0 : index
    %2 = vector.load %arg2[%c0_2, %c0_3] : memref<16x144xbf16, #tpu.memory_space<vmem>>, vector<16x144xbf16>
    %cst = arith.constant dense<0.000000e+00> : vector<16x225xf32>
    %3 = tpu.matmul %2, %1, %cst {dimension_numbers = #tpu.dot_dimension_numbers<[1], [0], [0], [1], [0, 0, 1, 1], [], []>} : vector<16x144xbf16>, vector<144x225xbf16>, vector<16x225xf32> -> vector<16x225xf32>
    %c0_4 = arith.constant 0 : index
    %c0_5 = arith.constant 0 : index
    %4 = vector.load %arg4[%c0_4, %c0_5] : memref<16x1xf32, #tpu.memory_space<vmem>>, vector<16x1xf32>
    %5 = vector.broadcast %4 : vector<16x1xf32> to vector<16x225xf32>
    %6 = arith.addf %3, %5 : vector<16x225xf32>
    %c0_6 = arith.constant 0 : index
    %c0_7 = arith.constant 0 : index
    %c0_8 = arith.constant 0 : index
    %7 = vector.load %arg5[%c0_6, %c0_7, %c0_8] : memref<1x16x225xf32, #tpu.memory_space<vmem>>, vector<1x16x225xf32>
    %8 = vector.shape_cast %7 : vector<1x16x225xf32> to vector<16x225xf32>
    %9 = vector.shape_cast %6 : vector<16x225xf32> to vector<1x16x225xf32>
    tpu.vector_store %arg5[%c0_6, %c0_7, %c0_8], %9 {strides = array<i32>} : memref<1x16x225xf32, #tpu.memory_space<vmem>>, vector<1x16x225xf32>,
    return
  }
  func.func @transform_0(%arg0: i32, %arg1: i32) -> (i32, i32) {
    %c0_i32 = arith.constant 0 : i32
    %c0_i32_0 = arith.constant 0 : i32
    %c0_i32_1 = arith.constant 0 : i32
    return %c0_i32, %c0_i32_0 : i32, i32
  }
  func.func @transform_1(%arg0: i32, %arg1: i32) -> (i32, i32, i32) {
    %c0_i32 = arith.constant 0 : i32
    %c0_i32_0 = arith.constant 0 : i32
    return %arg0, %c0_i32, %arg1 : i32, i32, i32
  }
  func.func @transform_2(%arg0: i32, %arg1: i32) -> (i32, i32) {
    %c0_i32 = arith.constant 0 : i32
    %c0_i32_0 = arith.constant 0 : i32
    %c0_i32_1 = arith.constant 0 : i32
    return %c0_i32, %c0_i32_0 : i32, i32
  }
  func.func @transform_3(%arg0: i32, %arg1: i32) -> (i32, i32, i32) {
    %c0_i32 = arith.constant 0 : i32
    %c0_i32_0 = arith.constant 0 : i32
    return %arg0, %c0_i32, %arg1 : i32, i32, i32
  }
}

module attributes {stable_mosaic.version = 11 : i64} {
  func.func @_lmatmul_bias_kernel(%arg0: i32, %arg1: i32, %arg2: memref<16x144xbf16, #tpu.memory_space<vmem>>, %arg3: memref<1x144x9xf32, #tpu.memory_space<vmem>>, %arg4: memref<16x1xf32, #tpu.memory_space<vmem>>, %arg5: memref<1x16x9xf32, #tpu.memory_space<vmem>>) attributes {dimension_semantics = [#tpu.dimension_semantics<parallel>, #tpu.dimension_semantics<parallel>], iteration_bounds = array<i64: 2, 1>, scalar_prefetch = 0 : i64, scratch_operands = 0 : i64, tpu.core_type = #tpu.core_type<tc>, window_params = [{pipeline_mode = #tpu.pipeline_mode<synchronous>, transform_indices = @transform_0, window_bounds = array<i64: 16, 144>}, {transform_indices = @transform_1, window_bounds = array<i64: 1, 144, 9>}, {pipeline_mode = #tpu.pipeline_mode<synchronous>, transform_indices = @transform_2, window_bounds = array<i64: 16, 1>}, {transform_indices = @transform_3, window_bounds = array<i64: 1, 16, 9>}]} {
    %c0 = arith.constant 0 : index
    %c0_0 = arith.constant 0 : index
    %c0_1 = arith.constant 0 : index
    %0 = vector.load %arg3[%c0, %c0_0, %c0_1] : memref<1x144x9xf32, #tpu.memory_space<vmem>>, vector<1x144x9xf32>
    %1 = vector.shape_cast %0 : vector<1x144x9xf32> to vector<144x9xf32>
    %2 = arith.truncf %1 : vector<144x9xf32> to vector<144x9xbf16>
    %c0_2 = arith.constant 0 : index
    %c0_3 = arith.constant 0 : index
    %3 = vector.load %arg2[%c0_2, %c0_3] : memref<16x144xbf16, #tpu.memory_space<vmem>>, vector<16x144xbf16>
    %cst = arith.constant dense<0.000000e+00> : vector<16x9xf32>
    %4 = tpu.matmul %3, %2, %cst {dimension_numbers = #tpu.dot_dimension_numbers<[1], [0], [0], [1], [0, 0, 1, 1], [], []>} : vector<16x144xbf16>, vector<144x9xbf16>, vector<16x9xf32> -> vector<16x9xf32>
    %c0_4 = arith.constant 0 : index
    %c0_5 = arith.constant 0 : index
    %5 = vector.load %arg4[%c0_4, %c0_5] : memref<16x1xf32, #tpu.memory_space<vmem>>, vector<16x1xf32>
    %6 = vector.broadcast %5 : vector<16x1xf32> to vector<16x9xf32>
    %7 = arith.addf %4, %6 : vector<16x9xf32>
    %c0_6 = arith.constant 0 : index
    %c0_7 = arith.constant 0 : index
    %c0_8 = arith.constant 0 : index
    %8 = vector.load %arg5[%c0_6, %c0_7, %c0_8] : memref<1x16x9xf32, #tpu.memory_space<vmem>>, vector<1x16x9xf32>
    %9 = vector.shape_cast %8 : vector<1x16x9xf32> to vector<16x9xf32>
    %10 = vector.shape_cast %7 : vector<16x9xf32> to vector<1x16x9xf32>
    tpu.vector_store %arg5[%c0_6, %c0_7, %c0_8], %10 {strides = array<i32>} : memref<1x16x9xf32, #tpu.memory_space<vmem>>, vector<1x16x9xf32>,
    return
  }
  func.func @transform_0(%arg0: i32, %arg1: i32) -> (i32, i32) {
    %c0_i32 = arith.constant 0 : i32
    %c0_i32_0 = arith.constant 0 : i32
    %c0_i32_1 = arith.constant 0 : i32
    return %c0_i32, %c0_i32_0 : i32, i32
  }
  func.func @transform_1(%arg0: i32, %arg1: i32) -> (i32, i32, i32) {
    %c0_i32 = arith.constant 0 : i32
    %c0_i32_0 = arith.constant 0 : i32
    return %arg0, %c0_i32, %arg1 : i32, i32, i32
  }
  func.func @transform_2(%arg0: i32, %arg1: i32) -> (i32, i32) {
    %c0_i32 = arith.constant 0 : i32
    %c0_i32_0 = arith.constant 0 : i32
    %c0_i32_1 = arith.constant 0 : i32
    return %c0_i32, %c0_i32_0 : i32, i32
  }
  func.func @transform_3(%arg0: i32, %arg1: i32) -> (i32, i32, i32) {
    %c0_i32 = arith.constant 0 : i32
    %c0_i32_0 = arith.constant 0 : i32
    return %arg0, %c0_i32, %arg1 : i32, i32, i32
  }
}

module attributes {stable_mosaic.version = 11 : i64} {
  func.func @_esa_tail_kernel(%arg0: i32, %arg1: i32, %arg2: memref<1x52x512xf32, #tpu.memory_space<vmem>>, %arg3: memref<9x512xf32, #tpu.memory_space<vmem>>, %arg4: memref<1x16x9xf32, #tpu.memory_space<vmem>>, %arg5: memref<16x52xbf16, #tpu.memory_space<vmem>>, %arg6: memref<16x1xf32, #tpu.memory_space<vmem>>, %arg7: memref<52x16xbf16, #tpu.memory_space<vmem>>, %arg8: memref<52x1xf32, #tpu.memory_space<vmem>>, %arg9: memref<1x52x512xf32, #tpu.memory_space<vmem>>) attributes {dimension_semantics = [#tpu.dimension_semantics<parallel>, #tpu.dimension_semantics<parallel>], iteration_bounds = array<i64: 2, 2>, scalar_prefetch = 0 : i64, scratch_operands = 0 : i64, tpu.core_type = #tpu.core_type<tc>, window_params = [{transform_indices = @transform_0, window_bounds = array<i64: 1, 52, 512>}, {transform_indices = @transform_1, window_bounds = array<i64: 9, 512>}, {transform_indices = @transform_2, window_bounds = array<i64: 1, 16, 9>}, {pipeline_mode = #tpu.pipeline_mode<synchronous>, transform_indices = @transform_3, window_bounds = array<i64: 16, 52>}, {pipeline_mode = #tpu.pipeline_mode<synchronous>, transform_indices = @transform_4, window_bounds = array<i64: 16, 1>}, {pipeline_mode = #tpu.pipeline_mode<synchronous>, transform_indices = @transform_5, window_bounds = array<i64: 52, 16>}, {pipeline_mode = #tpu.pipeline_mode<synchronous>, transform_indices = @transform_6, window_bounds = array<i64: 52, 1>}, {transform_indices = @transform_7, window_bounds = array<i64: 1, 52, 512>}]} {
    %c0 = arith.constant 0 : index
    %c0_0 = arith.constant 0 : index
    %c0_1 = arith.constant 0 : index
    %0 = vector.load %arg2[%c0, %c0_0, %c0_1] : memref<1x52x512xf32, #tpu.memory_space<vmem>>, vector<1x52x512xf32>
    %1 = vector.shape_cast %0 : vector<1x52x512xf32> to vector<52x512xf32>
    %c0_2 = arith.constant 0 : index
    %c0_3 = arith.constant 0 : index
    %2 = vector.load %arg5[%c0_2, %c0_3] : memref<16x52xbf16, #tpu.memory_space<vmem>>, vector<16x52xbf16>
    %3 = arith.truncf %1 : vector<52x512xf32> to vector<52x512xbf16>
    %cst = arith.constant dense<0.000000e+00> : vector<16x512xf32>
    %4 = tpu.matmul %2, %3, %cst {dimension_numbers = #tpu.dot_dimension_numbers<[1], [0], [0], [1], [0, 0, 1, 1], [], []>} : vector<16x52xbf16>, vector<52x512xbf16>, vector<16x512xf32> -> vector<16x512xf32>
    %c0_4 = arith.constant 0 : index
    %c0_5 = arith.constant 0 : index
    %5 = vector.load %arg6[%c0_4, %c0_5] : memref<16x1xf32, #tpu.memory_space<vmem>>, vector<16x1xf32>
    %6 = vector.broadcast %5 : vector<16x1xf32> to vector<16x512xf32>
    %7 = arith.addf %4, %6 : vector<16x512xf32>
    %c0_6 = arith.constant 0 : index
    %c0_7 = arith.constant 0 : index
    %c0_8 = arith.constant 0 : index
    %8 = vector.load %arg4[%c0_6, %c0_7, %c0_8] : memref<1x16x9xf32, #tpu.memory_space<vmem>>, vector<1x16x9xf32>
    %9 = vector.shape_cast %8 : vector<1x16x9xf32> to vector<16x9xf32>
    %c0_9 = arith.constant 0 : index
    %c0_10 = arith.constant 0 : index
    %10 = vector.load %arg3[%c0_9, %c0_10] : memref<9x512xf32, #tpu.memory_space<vmem>>, vector<9x512xf32>
    %cst_11 = arith.constant dense<0.000000e+00> : vector<16x512xf32>
    %11 = tpu.matmul %9, %10, %cst_11 {dimension_numbers = #tpu.dot_dimension_numbers<[1], [0], [0], [1], [0, 0, 1, 1], [], []>} : vector<16x9xf32>, vector<9x512xf32>, vector<16x512xf32> -> vector<16x512xf32>
    %12 = arith.addf %11, %7 : vector<16x512xf32>
    %13 = arith.truncf %12 : vector<16x512xf32> to vector<16x512xbf16>
    %c0_12 = arith.constant 0 : index
    %c0_13 = arith.constant 0 : index
    %14 = vector.load %arg7[%c0_12, %c0_13] : memref<52x16xbf16, #tpu.memory_space<vmem>>, vector<52x16xbf16>
    %cst_14 = arith.constant dense<0.000000e+00> : vector<52x512xf32>
    %15 = tpu.matmul %14, %13, %cst_14 {dimension_numbers = #tpu.dot_dimension_numbers<[1], [0], [0], [1], [0, 0, 1, 1], [], []>} : vector<52x16xbf16>, vector<16x512xbf16>, vector<52x512xf32> -> vector<52x512xf32>
    %c0_15 = arith.constant 0 : index
    %c0_16 = arith.constant 0 : index
    %16 = vector.load %arg8[%c0_15, %c0_16] : memref<52x1xf32, #tpu.memory_space<vmem>>, vector<52x1xf32>
    %17 = vector.broadcast %16 : vector<52x1xf32> to vector<52x512xf32>
    %18 = arith.addf %15, %17 : vector<52x512xf32>
    %19 = arith.negf %18 : vector<52x512xf32>
    %20 = math.exp %19 : vector<52x512xf32>
    %cst_17 = arith.constant 1.000000e+00 : f32
    %21 = vector.broadcast %cst_17 : f32 to vector<52x512xf32>
    %22 = arith.addf %21, %20 : vector<52x512xf32>
    %23 = arith.divf %21, %22 : vector<52x512xf32>
    %24 = arith.mulf %1, %23 : vector<52x512xf32>
    %c0_18 = arith.constant 0 : index
    %c0_19 = arith.constant 0 : index
    %c0_20 = arith.constant 0 : index
    %25 = vector.load %arg9[%c0_18, %c0_19, %c0_20] : memref<1x52x512xf32, #tpu.memory_space<vmem>>, vector<1x52x512xf32>
    %26 = vector.shape_cast %25 : vector<1x52x512xf32> to vector<52x512xf32>
    %27 = vector.shape_cast %24 : vector<52x512xf32> to vector<1x52x512xf32>
    tpu.vector_store %arg9[%c0_18, %c0_19, %c0_20], %27 {strides = array<i32>} : memref<1x52x512xf32, #tpu.memory_space<vmem>>, vector<1x52x512xf32>,
    return
  }
  func.func @transform_0(%arg0: i32, %arg1: i32) -> (i32, i32, i32) {
    %c0_i32 = arith.constant 0 : i32
    %c0_i32_0 = arith.constant 0 : i32
    return %arg0, %c0_i32, %arg1 : i32, i32, i32
  }
  func.func @transform_1(%arg0: i32, %arg1: i32) -> (i32, i32) {
    %c0_i32 = arith.constant 0 : i32
    %c0_i32_0 = arith.constant 0 : i32
    return %c0_i32, %arg1 : i32, i32
  }
  func.func @transform_2(%arg0: i32, %arg1: i32) -> (i32, i32, i32) {
    %c0_i32 = arith.constant 0 : i32
    %c0_i32_0 = arith.constant 0 : i32
    %c0_i32_1 = arith.constant 0 : i32
    return %arg0, %c0_i32, %c0_i32_0 : i32, i32, i32
  }
  func.func @transform_3(%arg0: i32, %arg1: i32) -> (i32, i32) {
    %c0_i32 = arith.constant 0 : i32
    %c0_i32_0 = arith.constant 0 : i32
    %c0_i32_1 = arith.constant 0 : i32
    return %c0_i32, %c0_i32_0 : i32, i32
  }
  func.func @transform_4(%arg0: i32, %arg1: i32) -> (i32, i32) {
    %c0_i32 = arith.constant 0 : i32
    %c0_i32_0 = arith.constant 0 : i32
    %c0_i32_1 = arith.constant 0 : i32
    return %c0_i32, %c0_i32_0 : i32, i32
  }
  func.func @transform_5(%arg0: i32, %arg1: i32) -> (i32, i32) {
    %c0_i32 = arith.constant 0 : i32
    %c0_i32_0 = arith.constant 0 : i32
    %c0_i32_1 = arith.constant 0 : i32
    return %c0_i32, %c0_i32_0 : i32, i32
  }
  func.func @transform_6(%arg0: i32, %arg1: i32) -> (i32, i32) {
    %c0_i32 = arith.constant 0 : i32
    %c0_i32_0 = arith.constant 0 : i32
    %c0_i32_1 = arith.constant 0 : i32
    return %c0_i32, %c0_i32_0 : i32, i32
  }
  func.func @transform_7(%arg0: i32, %arg1: i32) -> (i32, i32, i32) {
    %c0_i32 = arith.constant 0 : i32
    %c0_i32_0 = arith.constant 0 : i32
    return %arg0, %c0_i32, %arg1 : i32, i32, i32
  }
}

</mosaic_0001>

<bundles_post_ra>
// kernel: esa_forward.4
= control target key start
LH: loop header
LB: loop body
LE: loop exit
PB: predicated region body
PF: predicated region fallthrough
CT: control target
= control target key end

     0   :  { %s729_s12 = smov 0   ;;  %s731_s13 = smov 0   ;;  %s932_s0 = inlined_call_operand.vmem [shape: bf16[16,52], index: 0, kind: input, shape index: {}]   ;;  %s933_s1 = inlined_call_operand.vmem [shape: f32[2,52,1024], index: 1, kind: input, shape index: {}]   ;;  %s934_s2 = inlined_call_operand.vmem [shape: f32[16,1], index: 2, kind: input, shape index: {}]   ;;  %s935_s3 = inlined_call_operand.vmem [shape: bf16[2,16,1024], index: 3, kind: output, shape index: {}]  }
   0x1   :  { %s733_s14 = smov 0   ;;  %s735_s15 = smov 0  }
   0x2   :  { %s737_s16 = smov 0   ;;  %s739_s17 = smov 0  }
   0x3   :  { %s741_s18 = smov 0  }
   0x4 LB: > { %s22_s19 = sadd.s32 1, %s698_s16  ;;  %s25_s20 = sadd.s32 1, %s702_s17  ;;  %s706_s18 = sphi %s741_s18, %s13_s18   ;;  %s702_s17 = sphi %s739_s17, %s942_s17   ;;  %s698_s16 = sphi %s737_s16, %s941_s16   ;;  %s694_s15 = sphi %s735_s15, %s940_s15   ;;  %s690_s14 = sphi %s733_s14, %s939_s14   ;;  %s686_s13 = sphi %s731_s13, %s938_s13   ;;  %s682_s12 = sphi %s729_s12, %s937_s12  }
   0x5   : > { %p23_p0 = scmp.ge.s32.totalorder %s22_s19, 2  ;;  %s563_s21 = sadd.s32 4294967295, %s706_s18  }
   0x6   : > { %p62_p1 = scmp.ne.s32.totalorder %s686_s13, %s682_s12  ;;  %p63_p2 = scmp.eq.s32.totalorder %s706_s18, 0 }
   0x7   : > { %s944_s19 = smov (%p23_p0, %s22_s19), 0  ;;  %s946_s20 = smov (!%p23_p0, %s25_s20), %s702_s17 }
   0x8   : > { %p27_p3 = scmp.ge.s32.totalorder %s946_s20, 2  ;;  %p115_p4 = scmp.eq.s32.totalorder %s563_s21, 3 }
   0x9   : > { %s51_s22 = ssub.s32 %s698_s16, %s944_s19  ;;  %p64_p5 = por %p63_p2, %p62_p1 }
   0xa   : > { %s948_s20 = smov (%p27_p3, %s946_s20), 0  ;;  %p777_p6 = por %p115_p4, %p62_p1 }
   0xb   : > { %s50_s24 = ssub.s32 %s702_s17, %s948_s20  ;;  %s55_s26 = sadd.s32 1, %s686_s13 }
   0xc   : > { %s52_s25 = sor.u32 %s51_s22, %s50_s24  ;;  %p566_p8 = scmp.ge.s32.totalorder %s706_s18, 4 }
   0xd   : > { %p53_p7 = scmp.eq.s32.totalorder %s52_s25, 0 }
   0xe   : > { %143 = sbr.rel (%p566_p8) target bundleno = 41 (0x29), region = 24 }
   0xf   : > { %s785_s27 = scalar_select %p53_p7, %s686_s13, %s55_s26  }
  0x13   : > { %146 = sbr.rel (!%p64_p5) target bundleno = 41 (0x29), region = 28  ;;  %s148_s28 = sand.u32 (%p64_p5), 1, %s686_s13  }
  0x14   : > { %s590_s29 = smul.u32 (%p64_p5), 224, %s148_s28  ;;  %s567_s30 = sshll.u32 (%p64_p5), %s698_s16, 2 }
  0x15   : > { %s591_s4 = smul.u32 (%p64_p5), 56, %s702_s17 }
  0x16   : > { %s799_s10 = scalar_lea.vmem (%p64_p5), [#allocation2], %s590_s29 }
  0x17   : > { %s153_s5 = sadd.s32 (%p64_p5), %s591_s4, %s567_s30 }
  0x18   : > { %s568_s6 = sshll.u32 %s153_s5, 3 }
  0x19   : > { %s794_s9 = scalar_lea.vmem %s933_s1, %s568_s6 }
  0x1a   : > { %v168_v0 = vld [vmem:[%s794_s9] sm:$0xff]  ;;  %v170_v1 = vld [vmem:[%s794_s9 + $0x8] sm:$0xff]  ;;  %v172_v2 = vld [vmem:[%s794_s9 + $0x10] sm:$0xff] }
  0x1b   : > { %169 = vst [vmem:[%s799_s10] sm:$0xff] %v168_v0  ;;  %171 = vst [vmem:[%s799_s10 + $0x8] sm:$0xff] %v170_v1  ;;  %v174_v3 = vld [vmem:[%s794_s9 + $0x18] sm:$0xff]  ;;  %v176_v4 = vld [vmem:[%s794_s9 + $0x40] sm:$0xff] }
  0x1c   : > { %173 = vst [vmem:[%s799_s10 + $0x10] sm:$0xff] %v172_v2  ;;  %v178_v5 = vld [vmem:[%s794_s9 + $0x48] sm:$0xff]  ;;  %175 = vst [vmem:[%s799_s10 + $0x18] sm:$0xff] %v174_v3  ;;  %v180_v6 = vld [vmem:[%s794_s9 + $0x50] sm:$0xff] }
  0x1d   : > { %177 = vst [vmem:[%s799_s10 + $0x20] sm:$0xff] %v176_v4  ;;  %179 = vst [vmem:[%s799_s10 + $0x28] sm:$0xff] %v178_v5  ;;  %v182_v7 = vld [vmem:[%s794_s9 + $0x58] sm:$0xff]  ;;  %v184_v8 = vld [vmem:[%s794_s9 + $0x80] sm:$0xff] }
  0x1e   : > { %181 = vst [vmem:[%s799_s10 + $0x30] sm:$0xff] %v180_v6  ;;  %183 = vst [vmem:[%s799_s10 + $0x38] sm:$0xff] %v182_v7  ;;  %v186_v9 = vld [vmem:[%s794_s9 + $0x88] sm:$0xff]  ;;  %v188_v10 = vld [vmem:[%s794_s9 + $0x90] sm:$0xff] }
  0x1f   : > { %185 = vst [vmem:[%s799_s10 + $0x40] sm:$0xff] %v184_v8  ;;  %v190_v11 = vld [vmem:[%s794_s9 + $0x98] sm:$0xff]  ;;  %187 = vst [vmem:[%s799_s10 + $0x48] sm:$0xff] %v186_v9  ;;  %v192_v12 = vld [vmem:[%s794_s9 + $0xc0] sm:$0xff] }
  0x20   : > { %189 = vst [vmem:[%s799_s10 + $0x50] sm:$0xff] %v188_v10  ;;  %191 = vst [vmem:[%s799_s10 + $0x58] sm:$0xff] %v190_v11  ;;  %v194_v13 = vld [vmem:[%s794_s9 + $0xc8] sm:$0xff]  ;;  %v196_v14 = vld [vmem:[%s794_s9 + $0xd0] sm:$0xff] }
  0x21   : > { %193 = vst [vmem:[%s799_s10 + $0x60] sm:$0xff] %v192_v12  ;;  %195 = vst [vmem:[%s799_s10 + $0x68] sm:$0xff] %v194_v13  ;;  %v198_v15 = vld [vmem:[%s794_s9 + $0xd8] sm:$0xff]  ;;  %v200_v16 = vld [vmem:[%s794_s9 + $0x100] sm:$0xff] }
  0x22   : > { %197 = vst [vmem:[%s799_s10 + $0x70] sm:$0xff] %v196_v14  ;;  %v202_v17 = vld [vmem:[%s794_s9 + $0x108] sm:$0xff]  ;;  %199 = vst [vmem:[%s799_s10 + $0x78] sm:$0xff] %v198_v15  ;;  %v204_v18 = vld [vmem:[%s794_s9 + $0x110] sm:$0xff] }
  0x23   : > { %201 = vst [vmem:[%s799_s10 + $0x80] sm:$0xff] %v200_v16  ;;  %203 = vst [vmem:[%s799_s10 + $0x88] sm:$0xff] %v202_v17  ;;  %v206_v19 = vld [vmem:[%s794_s9 + $0x118] sm:$0xff]  ;;  %v208_v20 = vld [vmem:[%s794_s9 + $0x140] sm:$0xff] }
  0x24   : > { %205 = vst [vmem:[%s799_s10 + $0x90] sm:$0xff] %v204_v18  ;;  %207 = vst [vmem:[%s799_s10 + $0x98] sm:$0xff] %v206_v19  ;;  %v210_v21 = vld [vmem:[%s794_s9 + $0x148] sm:$0xff]  ;;  %v212_v22 = vld [vmem:[%s794_s9 + $0x150] sm:$0xff] }
  0x25   : > { %209 = vst [vmem:[%s799_s10 + $0xa0] sm:$0xff] %v208_v20  ;;  %v214_v23 = vld [vmem:[%s794_s9 + $0x158] sm:$0xff]  ;;  %211 = vst [vmem:[%s799_s10 + $0xa8] sm:$0xff] %v210_v21  ;;  %v216_v24 = vld [vmem:[%s794_s9 + $0x180] sm:$0xff] }
  0x26   : > { %213 = vst [vmem:[%s799_s10 + $0xb0] sm:$0xff] %v212_v22  ;;  %215 = vst [vmem:[%s799_s10 + $0xb8] sm:$0xff] %v214_v23  ;;  %v218_v25 = vld [vmem:[%s794_s9 + $0x188] sm:$0xff]  ;;  %v220_v26 = vld [vmem:[%s794_s9 + $0x190] sm:$0xff] }
  0x27   : > { %217 = vst [vmem:[%s799_s10 + $0xc0] sm:$0xff] %v216_v24  ;;  %219 = vst [vmem:[%s799_s10 + $0xc8] sm:$0xff] %v218_v25  ;;  %v222_v27 = vld [vmem:[%s794_s9 + $0x198] sm:$0xff] }
  0x28   : > { %221 = vst [vmem:[%s799_s10 + $0xd0] sm:$0xff] %v220_v26  ;;  %223 = vst [vmem:[%s799_s10 + $0xd8] sm:$0xff] %v222_v27 }
  0x29 PF: > { %p569_p9 = scmp.ge.s32.totalorder %s706_s18, 1  ;;  %p228_p10 = scmp.lt.s32.totalorder %s706_s18, 5 }
  0x2b   : > { %p229_p11 = pnand %p569_p9, %p228_p10 }
  0x2c   : > { %s235_s11 = sand.u32 (!%p229_p11), 1, %s682_s12  }
  0x2d   : > { %232 = sbr.rel (%p229_p11) target bundleno = 282 (0x11a), region = 51  ;;  %s570_s4 = sshll.u32 (!%p229_p11), %s235_s11, 5 }
  0x2e   : > { %s592_s21 = smul.u32 (!%p229_p11), 224, %s235_s11  ;;  %s256_s5 = scalar_lea.vmem (!%p229_p11), [#allocation3], %s570_s4 }
  0x30   : > { %s865_s28 = scalar_lea.vmem (!%p229_p11), [#allocation2], %s592_s21 }
  0x32   : > { %v708_v28 = vmov 0   ;;  %v306_v29 = vld [vmem:[%s934_s2] sm:$0xff]  ;;  %vm327_vm0 = vcmask 1041408   ;;  %v307_v30 = vld [vmem:[%s934_s2 + $0x8] sm:$0xff]  ;;  %v287_v32 = vld [vmem:[%s865_s28 + $0xd8] sm:$0xf] }
  0x33   : > { %372 = vmatprep.mubr.bf16.mxu0 %v708_v28  ;;  %415 = vmatprep.mubr.bf16.mxu1 %v708_v28  ;;  %v285_v31 = vld [vmem:[%s865_s28 + $0xc8] sm:$0xf]  ;;  %v284_v33 = vld [vmem:[%s865_s28 + $0xc0] sm:$0xf]  ;;  %v303_v35 = vpack.c.bf16 %v287_v32, %v287_v32  ;;  %v286_v37 = vld [vmem:[%s865_s28 + $0xd0] sm:$0xf] }
  0x34   : > { %650 = vset.pattern.permute.xlu0 %v708_v28  ;;  %v301_v34 = vpack.c.bf16 %v285_v31, %v285_v31  ;;  %v300_v36 = vpack.c.bf16 %v284_v33, %v284_v33  ;;  %v277_v38 = vld [vmem:[%s865_s28 + $0x88] sm:$0xff]  ;;  %v302_v40 = vpack.c.bf16 %v286_v37, %v286_v37  ;;  %v279_v42 = vld [vmem:[%s865_s28 + $0x98] sm:$0xff]  ;;  %v276_v44 = vld [vmem:[%s865_s28 + $0x80] sm:$0xff]  ;;  %vm323_vm1 = vcmask 424960   ;;  %s581_s12 = sshll.u32 (%p777_p6), %s690_s14, 2  ;;  %s582_s6 = sshll.u32 (%p777_p6), %s694_s15, 4 }
  0x35   : > { %310 = vperm.xlu0 %650, %v306_v29   ;;  %v281_v39 = vld [vmem:[%s865_s28 + $0xa8] sm:$0xff]  ;;  %v283_v43 = vld [vmem:[%s865_s28 + $0xb8] sm:$0xff]  ;;  %574 = vmatprep.subr.msk.bf16.mxu1 %vm327_vm0, %v303_v35  ;;  %v280_v47 = vld [vmem:[%s865_s28 + $0xa0] sm:$0xff]  ;;  %s463_s7 = sadd.s32 (%p777_p6), %s582_s6, %s581_s12 }
  0x36   : > { %v297_v41 = vpack.c.bf16 %v281_v39, %v277_v38  ;;  %572 = vmatprep.subr.msk.bf16.mxu0 %vm327_vm0, %v301_v34  ;;  %v329_v45 = vsel %vm327_vm0, %v300_v36, 0  ;;  %v299_v46 = vpack.c.bf16 %v283_v43, %v279_v42  ;;  %v278_v48 = vld [vmem:[%s865_s28 + $0x90] sm:$0xff]  ;;  %v335_v50 = vsel %vm327_vm0, %v302_v40, 0  ;;  %v269_v52 = vld [vmem:[%s865_s28 + $0x48] sm:$0xff]  ;;  %v271_v54 = vld [vmem:[%s865_s28 + $0x58] sm:$0xff]  ;;  %s583_s8 = sshll.u32 (%p777_p6), %s463_s7, 2 }
  0x37   : > { %v282_v49 = vld [vmem:[%s865_s28 + $0xb0] sm:$0xff]  ;;  %349 = vmatpush1.bf16.msra.mxu0 %v329_v45  ;;  %v296_v51 = vpack.c.bf16 %v280_v47, %v276_v44  ;;  %v273_v53 = vld [vmem:[%s865_s28 + $0x68] sm:$0xff]  ;;  %392 = vmatpush1.bf16.msra.mxu1 %v335_v50  ;;  %v275_v57 = vld [vmem:[%s865_s28 + $0x78] sm:$0xff]  ;;  %s465_s11 = scalar_lea.vmem (%p777_p6), %s935_s3, %s583_s8 }
  0x38   : > { %350 = vmatprep.subr.bf16.mxu0 %v297_v41  ;;  %v298_v55 = vpack.c.bf16 %v282_v49, %v278_v48  ;;  %v293_v56 = vpack.c.bf16 %v273_v53, %v269_v52  ;;  %v268_v58 = vld [vmem:[%s865_s28 + $0x40] sm:$0xff]  ;;  %393 = vmatprep.subr.bf16.mxu1 %v299_v46  ;;  %v295_v60 = vpack.c.bf16 %v275_v57, %v271_v54  ;;  %v270_v61 = vld [vmem:[%s865_s28 + $0x50] sm:$0xff]  ;;  %v261_v63 = vld [vmem:[%s865_s28 + $0x8] sm:$0xff] }
  0x39   : > { %315 = vperm.xlu0 %650, %v307_v30   ;;  %v272_v59 = vld [vmem:[%s865_s28 + $0x60] sm:$0xff]  ;;  %v274_v62 = vld [vmem:[%s865_s28 + $0x70] sm:$0xff]  ;;  %v265_v0 = vld [vmem:[%s865_s28 + $0x28] sm:$0xff] }
  0x3a   : > { %v263_v1 = vld [vmem:[%s865_s28 + $0x18] sm:$0xff]  ;;  %v292_v3 = vpack.c.bf16 %v272_v59, %v268_v58  ;;  %v294_v4 = vpack.c.bf16 %v274_v62, %v270_v61  ;;  %v289_v5 = vpack.c.bf16 %v265_v0, %v261_v63  ;;  %v260_v6 = vld [vmem:[%s865_s28] sm:$0xff]  ;;  %v262_v9 = vld [vmem:[%s865_s28 + $0x10] sm:$0xff] }
  0x3b   : > { %v267_v2 = vld [vmem:[%s865_s28 + $0x38] sm:$0xff]  ;;  %351 = vmatpush1.bf16.msra.mxu0 %v296_v51  ;;  %394 = vmatpush1.bf16.msra.mxu1 %v298_v55  ;;  %v264_v7 = vld [vmem:[%s865_s28 + $0x20] sm:$0xff]  ;;  %v266_v10 = vld [vmem:[%s865_s28 + $0x30] sm:$0xff] }
  0x3c   : > { %352 = vmatprep.subr.bf16.mxu0 %v293_v56  ;;  %395 = vmatprep.subr.bf16.mxu1 %v295_v60  ;;  %v291_v8 = vpack.c.bf16 %v267_v2, %v263_v1  ;;  %v288_v11 = vpack.c.bf16 %v264_v7, %v260_v6  ;;  %v290_v12 = vpack.c.bf16 %v266_v10, %v262_v9  ;;  %v651_v13 = vld [vmem:[%s932_s0] sm:$0xff]  }
  0x3f   : > { %353 = vmatpush1.bf16.msra.mxu0 %v292_v3  ;;  %396 = vmatpush1.bf16.msra.mxu1 %v294_v4 }
  0x40   : > { %354 = vmatprep.subr.bf16.mxu0 %v289_v5  ;;  %397 = vmatprep.subr.bf16.mxu1 %v291_v8 }
  0x43   : > { %355 = vmatpush1.bf16.msra.mxu0 %v288_v11  ;;  %398 = vmatpush1.bf16.msra.mxu1 %v290_v12 }
  0x46   : > { %573 = vmatmul.mubr.msk.bf16.vlgmr.msra.gmra.mxu0 %vm323_vm1, %v651_v13  ;;  %575 = vmatmul.mubr.msk.bf16.vlgmr.msra.gmra.mxu1 %vm323_vm1, %v651_v13 }
  0xb0   : > { %v311_v14 = vpop.permute.xlu0 %310 }
  0xb4   : > { %v316_v26 = vpop.permute.xlu0 %315 }
 0x106   : > { %v374_v15 = vpop.f32.mrf.mxu0  ;;  %v417_v16 = vpop.f32.mrf.mxu1 }
 0x107   : > { %v375_v18 = vadd.f32 %v374_v15, %v311_v14  ;;  %v418_v21 = vadd.f32 %v417_v16, %v311_v14 }
 0x108   : > { %v376_v17 = vpop.f32.mrf.mxu0  ;;  %v419_v20 = vpop.f32.mrf.mxu1 }
 0x109   : > { %v377_v19 = vadd.f32 %v376_v17, %v311_v14  ;;  %v420_v22 = vadd.f32 %v419_v20, %v311_v14 }
 0x10a   : > { %v378_v23 = vpop.f32.mrf.mxu0  ;;  %v421_v25 = vpop.f32.mrf.mxu1 }
 0x10b   : > { %v586_v24 = vpack.c.bf16 %v377_v19, %v375_v18  ;;  %v587_v27 = vpack.c.bf16 %v420_v22, %v418_v21  ;;  %v379_v29 = vadd.f32 %v378_v23, %v316_v26  ;;  %v422_v32 = vadd.f32 %v421_v25, %v316_v26 }
 0x10c   : > { %v380_v28 = vpop.f32.mrf.mxu0  ;;  %v423_v31 = vpop.f32.mrf.mxu1 }
 0x10d   : > { %450 = vst [vmem:[%s256_s5] sm:$0xff] %v586_v24  ;;  %v381_v30 = vadd.f32 %v380_v28, %v316_v26  ;;  %451 = vst [vmem:[%s256_s5 + $0x8] sm:$0xff] %v587_v27  ;;  %v424_v33 = vadd.f32 %v423_v31, %v316_v26  ;;  %460 = sbr.rel (!%p777_p6) target bundleno = 282 (0x11a), region = 59 }
 0x10f   : > { %v588_v34 = vpack.c.bf16 %v381_v30, %v379_v29  ;;  %v589_v35 = vpack.c.bf16 %v424_v33, %v422_v32 }
 0x111   : > { %452 = vst [vmem:[%s256_s5 + $0x10] sm:$0xff] %v588_v34  ;;  %453 = vst [vmem:[%s256_s5 + $0x18] sm:$0xff] %v589_v35 }
 0x114   : > { %v478_v36 = vld [vmem:[%s256_s5] sm:$0xff]  ;;  %v480_v37 = vld [vmem:[%s256_s5 + $0x8] sm:$0xff] }
 0x115   : > { %479 = vst [vmem:[%s465_s11] sm:$0xff] %v478_v36  ;;  %481 = vst [vmem:[%s465_s11 + $0x8] sm:$0xff] %v480_v37 }
 0x118   : > { %v482_v38 = vld [vmem:[%s256_s5 + $0x10] sm:$0xff]  ;;  %v484_v39 = vld [vmem:[%s256_s5 + $0x18] sm:$0xff] }
 0x119   : > { %483 = vst [vmem:[%s465_s11 + $0x20] sm:$0xff] %v482_v38  ;;  %485 = vst [vmem:[%s465_s11 + $0x28] sm:$0xff] %v484_v39 }
 0x11a PF: > { %s13_s18 = sadd.s32 1, %s706_s18   ;;  %s937_s12 = smov %s686_s13 }
 0x11b   : > { %p10_p12 = scmp.ge.s32.totalorder %s13_s18, 6   ;;  %s938_s13 = smov %s785_s27 }
 0x11c   : > { %s939_s14 = smov %s698_s16  ;;  %s940_s15 = smov %s702_s17 }
 0x11d   : > { %s941_s16 = smov %s944_s19  ;;  %s942_s17 = smov %s948_s20 }
 0x11e   :  { %12 = sbr.rel (!%p10_p12) target bundleno = 4 (0x4), region = 113 }

// kernel: esa_forward.5
= control target key start
LH: loop header
LB: loop body
LE: loop exit
PB: predicated region body
PF: predicated region fallthrough
CT: control target
= control target key end

     0   :  { %s615_s12 = smov 0   ;;  %s617_s13 = smov 0   ;;  %s684_s0 = inlined_call_operand.vmem [shape: bf16[16,144], index: 0, kind: input, shape index: {}]   ;;  %s685_s1 = inlined_call_operand.vmem [shape: bf16[2,144,225], index: 1, kind: input, shape index: {}]   ;;  %s686_s2 = inlined_call_operand.vmem [shape: f32[16,1], index: 2, kind: input, shape index: {}]   ;;  %s687_s3 = inlined_call_operand.vmem [shape: f32[2,16,225], index: 3, kind: output, shape index: {}]  }
   0x1   :  { %s619_s14 = smov 0  }
   0x2 LB: > { %s25_s15 = sadd.s32 1, %s588_s13  ;;  %p485_p0 = scmp.ge.s32.totalorder %s592_s14, 1  ;;  %s592_s14 = sphi %s619_s14, %s13_s14   ;;  %s588_s13 = sphi %s617_s13, %s689_s13   ;;  %s584_s12 = sphi %s615_s12, %s688_s12  }
   0x3   : > { %p27_p1 = scmp.ge.s32.totalorder %s25_s15, 2  ;;  %p158_p2 = scmp.lt.s32.totalorder %s592_s14, 3 }
   0x5   : > { %s691_s15 = smov (%p27_p1, %s25_s15), 0  ;;  %p159_p3 = pnand %p485_p0, %p158_p2 }
   0x6   : > { %p191_p4 = scmp.lt.s32.totalorder (!%p159_p3), %s584_s12, 1 }
   0x7   : > { %162 = sbr.rel (%p159_p3) target bundleno = 255 (0xff), region = 32 }
   0xc   : > { %vm342_vm0 = vcmask 130048   ;;  %v569_v0 = vld [vmem:[%s684_s0 + $0x4] ss:$8 sps:$4 sm:$0xff]   ;;  %s693_s12 = smov (!%p191_p4, %s584_s12), 1  ;;  %v594_v2 = vmov 0   ;;  %vm390_vm1 = vcmask 793600  }
   0xd   : > { %v231_v1 = vld [vmem:[%s686_s2] sm:$0xff]  ;;  %539 = vset.pattern.permute.xlu0 %v594_v2  ;;  %509 = vmatprep.mubr.msk.bf16.mxu0 %vm342_vm0, %v569_v0  ;;  %s513_s20 = smul.u32 144, %s693_s12  ;;  %v232_v3 = vld [vmem:[%s686_s2 + $0x8] sm:$0xff]  ;;  %s512_s28 = sshll.u32 %s693_s12, 5 }
   0xe   : > { %235 = vperm.xlu0 %539, %v231_v1   ;;  %v567_v22 = vld [vmem:[%s684_s0] ss:$8 sps:$4 sm:$0xff]   ;;  %s208_s4 = scalar_lea.vmem %s687_s3, %s512_s28 }
   0xf   : > { %s648_s25 = scalar_lea.vmem %s685_s1, %s513_s20 }
  0x10   : > { %v540_v4 = vld [vmem:[%s648_s25 + $0x74] ss:$8 sps:$4 sm:$0xff]   ;;  %v542_v5 = vld [vmem:[%s648_s25 + $0x70] ss:$8 sps:$4 sm:$0xff]   ;;  %v543_v6 = vld [vmem:[%s648_s25 + $0x64] ss:$8 sps:$4 sm:$0xff]  }
  0x11   : > { %346 = vmatprep.subr.bf16.mxu0 %v540_v4  ;;  %v545_v7 = vld [vmem:[%s648_s25 + $0x60] ss:$8 sps:$4 sm:$0xff]   ;;  %v546_v8 = vld [vmem:[%s648_s25 + $0x54] ss:$8 sps:$4 sm:$0xff]   ;;  %v548_v9 = vld [vmem:[%s648_s25 + $0x50] ss:$8 sps:$4 sm:$0xff]  }
  0x12   : > { %240 = vperm.xlu0 %539, %v232_v3   ;;  %347 = vmatpush1.bf16.msra.mxu0 %v542_v5  ;;  %v549_v10 = vld [vmem:[%s648_s25 + $0x44] ss:$8 sps:$4 sm:$0xff]   ;;  %v551_v11 = vld [vmem:[%s648_s25 + $0x40] ss:$8 sps:$4 sm:$0xff]   ;;  %v552_v12 = vld [vmem:[%s648_s25 + $0x34] ss:$8 sps:$4 sm:$0xff]  }
  0x13   : > { %348 = vmatprep.subr.bf16.mxu0 %v543_v6  ;;  %v554_v13 = vld [vmem:[%s648_s25 + $0x30] ss:$8 sps:$4 sm:$0xff]   ;;  %v555_v14 = vld [vmem:[%s648_s25 + $0x24] ss:$8 sps:$4 sm:$0xff]   ;;  %v557_v15 = vld [vmem:[%s648_s25 + $0x20] ss:$8 sps:$4 sm:$0xff]  }
  0x14   : > { %v558_v16 = vld [vmem:[%s648_s25 + $0x14] ss:$8 sps:$4 sm:$0xff]   ;;  %v560_v17 = vld [vmem:[%s648_s25 + $0x10] ss:$8 sps:$4 sm:$0xff]   ;;  %v561_v18 = vld [vmem:[%s648_s25 + $0x4] ss:$8 sps:$4 sm:$0xff]  }
  0x15   : > { %v563_v19 = vld [vmem:[%s648_s25] ss:$8 sps:$4 sm:$0xff]   ;;  %v564_v20 = vld [vmem:[%s648_s25 + $0x84] ss:$8 sps:$4 sm:$0xff]  }
  0x16   : > { %349 = vmatpush1.bf16.msra.mxu0 %v545_v7  ;;  %v566_v21 = vld [vmem:[%s648_s25 + $0x80] ss:$8 sps:$4 sm:$0xff]  }
  0x17   : > { %350 = vmatprep.subr.bf16.mxu0 %v546_v8 }
  0x1a   : > { %351 = vmatpush1.bf16.msra.mxu0 %v548_v9 }
  0x1b   : > { %352 = vmatprep.subr.bf16.mxu0 %v549_v10 }
  0x1e   : > { %353 = vmatpush1.bf16.msra.mxu0 %v551_v11 }
  0x1f   : > { %354 = vmatprep.subr.bf16.mxu0 %v552_v12 }
  0x22   : > { %355 = vmatpush1.bf16.msra.mxu0 %v554_v13 }
  0x23   : > { %356 = vmatprep.subr.bf16.mxu0 %v555_v14 }
  0x26   : > { %357 = vmatpush1.bf16.msra.mxu0 %v557_v15 }
  0x27   : > { %358 = vmatprep.subr.bf16.mxu0 %v558_v16 }
  0x2a   : > { %359 = vmatpush1.bf16.msra.mxu0 %v560_v17 }
  0x2b   : > { %360 = vmatprep.subr.bf16.mxu0 %v561_v18 }
  0x2e   : > { %361 = vmatpush1.bf16.msra.mxu0 %v563_v19 }
  0x2f   : > { %376 = vmatprep.subr.bf16.mxu0 %v564_v20 }
  0x32   : > { %377 = vmatpush2.bf16.msra.mxu0 %v566_v21 }
  0x35   : > { %379 = vmatmul.mubr.bf16.vlgmr.msra.gmra.mxu0 %v567_v22 }
  0x89   : > { %v236_v23 = vpop.permute.xlu0 %235 }
  0x8d   : > { %v241_v28 = vpop.permute.xlu0 %240 }
  0xf5   : > { %v380_v24 = vpop.f32.mrf.mxu0 }
  0xf6   : > { %v381_v25 = vadd.f32 %v380_v24, %v236_v23 }
  0xf7   : > { %v382_v26 = vpop.f32.mrf.mxu0 }
  0xf8   : > { %389 = vst [vmem:[%s208_s4] sm:$0xff] %v381_v25  ;;  %v383_v27 = vadd.f32 %v382_v26, %v236_v23 }
  0xf9   : > { %v384_v29 = vpop.f32.mrf.mxu0 }
  0xfa   : > { %391 = vst.msk [vmem:[%s208_s4 + $0x8] sm:$0xff] %vm390_vm1, %v383_v27  ;;  %v385_v30 = vadd.f32 %v384_v29, %v241_v28 }
  0xfb   : > { %v386_v31 = vpop.f32.mrf.mxu0 }
  0xfc   : > { %392 = vst [vmem:[%s208_s4 + $0x10] sm:$0xff] %v385_v30  ;;  %v387_v32 = vadd.f32 %v386_v31, %v241_v28 }
  0xfe   : > { %393 = vst.msk [vmem:[%s208_s4 + $0x18] sm:$0xff] %vm390_vm1, %v387_v32 }
  0xff PF: > { %s13_s14 = sadd.s32 1, %s592_s14   ;;  %s688_s12 = smov %s588_s13 }
 0x100   : > { %p10_p5 = scmp.ge.s32.totalorder %s13_s14, 4   ;;  %s689_s13 = smov %s691_s15 }
 0x102   :  { %12 = sbr.rel (!%p10_p5) target bundleno = 2 (0x2), region = 62 }

// kernel: esa_forward.6
= control target key start
LH: loop header
LB: loop body
LE: loop exit
PB: predicated region body
PF: predicated region fallthrough
CT: control target
= control target key end

     0   :  { %s473_s12 = smov 0   ;;  %s475_s13 = smov 0   ;;  %s542_s0 = inlined_call_operand.vmem [shape: bf16[16,144], index: 0, kind: input, shape index: {}]   ;;  %s543_s1 = inlined_call_operand.vmem [shape: f32[2,144,9], index: 1, kind: input, shape index: {}]   ;;  %s544_s2 = inlined_call_operand.vmem [shape: f32[16,1], index: 2, kind: input, shape index: {}]   ;;  %s545_s3 = inlined_call_operand.vmem [shape: f32[2,16,9], index: 3, kind: output, shape index: {}]  }
   0x1   :  { %s477_s14 = smov 0  }
   0x2 LB: > { %s25_s15 = sadd.s32 1, %s446_s13  ;;  %p388_p0 = scmp.ge.s32.totalorder %s450_s14, 1  ;;  %s450_s14 = sphi %s477_s14, %s13_s14   ;;  %s446_s13 = sphi %s475_s13, %s547_s13   ;;  %s442_s12 = sphi %s473_s12, %s546_s12  }
   0x3   : > { %p27_p1 = scmp.ge.s32.totalorder %s25_s15, 2  ;;  %p156_p2 = scmp.lt.s32.totalorder %s450_s14, 3 }
   0x5   : > { %s549_s15 = smov (%p27_p1, %s25_s15), 0  ;;  %p157_p3 = pnand %p388_p0, %p156_p2 }
   0x6   : > { %p186_p4 = scmp.lt.s32.totalorder (!%p157_p3), %s442_s12, 1 }
   0x7   : > { %160 = sbr.rel (%p157_p3) target bundleno = 254 (0xfe), region = 32 }
   0xc   : > { %v452_v0 = vmov 0   ;;  %v427_v1 = vld [vmem:[%s542_s0 + $0x4] ss:$8 sps:$4 sm:$0xff]   ;;  %vm253_vm0 = vcmask 130048   ;;  %s551_s12 = smov (!%p186_p4, %s442_s12), 1  ;;  %vm298_vm1 = vcmask 72704  }
   0xd   : > { %257 = vmatprep.subr.bf16.mxu0 %v452_v0  ;;  %424 = vset.pattern.permute.xlu0 %v452_v0  ;;  %v232_v2 = vld [vmem:[%s544_s2] sm:$0xff]  ;;  %v233_v3 = vld [vmem:[%s544_s2 + $0x8] sm:$0xff]  ;;  %s398_s22 = smul.u32 144, %s551_s12  ;;  %s397_s28 = sshll.u32 %s551_s12, 4 }
   0xe   : > { %236 = vperm.xlu0 %424, %v232_v2   ;;  %394 = vmatprep.mubr.msk.bf16.mxu0 %vm253_vm0, %v427_v1  ;;  %v425_v31 = vld [vmem:[%s542_s0] ss:$8 sps:$4 sm:$0xff]   ;;  %s201_s4 = scalar_lea.vmem %s545_s3, %s397_s28 }
   0xf   : > { %s506_s25 = scalar_lea.vmem %s543_s1, %s398_s22 }
  0x10   : > { %v217_v4 = vld [vmem:[%s506_s25 + $0x70] sm:$0xff]  ;;  %v218_v5 = vld [vmem:[%s506_s25 + $0x78] sm:$0xff]  ;;  %v215_v6 = vld [vmem:[%s506_s25 + $0x60] sm:$0xff] }
  0x11   : > { %v228_v7 = vpack.c.bf16 %v218_v5, %v217_v4  ;;  %v216_v8 = vld [vmem:[%s506_s25 + $0x68] sm:$0xff]  ;;  %v213_v10 = vld [vmem:[%s506_s25 + $0x50] sm:$0xff]  ;;  %v214_v11 = vld [vmem:[%s506_s25 + $0x58] sm:$0xff] }
  0x12   : > { %241 = vperm.xlu0 %424, %v233_v3   ;;  %v227_v9 = vpack.c.bf16 %v216_v8, %v215_v6  ;;  %v226_v12 = vpack.c.bf16 %v214_v11, %v213_v10  ;;  %v211_v13 = vld [vmem:[%s506_s25 + $0x40] sm:$0xff]  ;;  %v212_v14 = vld [vmem:[%s506_s25 + $0x48] sm:$0xff]  ;;  %v209_v16 = vld [vmem:[%s506_s25 + $0x30] sm:$0xff] }
  0x13   : > { %258 = vmatpush1.bf16.msra.mxu0 %v228_v7  ;;  %v225_v15 = vpack.c.bf16 %v212_v14, %v211_v13  ;;  %v210_v17 = vld [vmem:[%s506_s25 + $0x38] sm:$0xff]  ;;  %v207_v19 = vld [vmem:[%s506_s25 + $0x20] sm:$0xff]  ;;  %v208_v20 = vld [vmem:[%s506_s25 + $0x28] sm:$0xff] }
  0x14   : > { %259 = vmatprep.subr.bf16.mxu0 %v452_v0  ;;  %v224_v18 = vpack.c.bf16 %v210_v17, %v209_v16  ;;  %v223_v21 = vpack.c.bf16 %v208_v20, %v207_v19  ;;  %v205_v22 = vld [vmem:[%s506_s25 + $0x10] sm:$0xff]  ;;  %v206_v23 = vld [vmem:[%s506_s25 + $0x18] sm:$0xff]  ;;  %v203_v25 = vld [vmem:[%s506_s25] sm:$0xff] }
  0x15   : > { %v222_v24 = vpack.c.bf16 %v206_v23, %v205_v22  ;;  %v204_v26 = vld [vmem:[%s506_s25 + $0x8] sm:$0xff]  ;;  %v219_v28 = vld [vmem:[%s506_s25 + $0x80] sm:$0xff] }
  0x16   : > { %v221_v27 = vpack.c.bf16 %v204_v26, %v203_v25  ;;  %v220_v29 = vld [vmem:[%s506_s25 + $0x88] sm:$0xff] }
  0x17   : > { %260 = vmatpush1.bf16.msra.mxu0 %v227_v9  ;;  %v229_v30 = vpack.c.bf16 %v220_v29, %v219_v28 }
  0x18   : > { %261 = vmatprep.subr.bf16.mxu0 %v452_v0 }
  0x1b   : > { %262 = vmatpush1.bf16.msra.mxu0 %v226_v12 }
  0x1c   : > { %263 = vmatprep.subr.bf16.mxu0 %v452_v0 }
  0x1f   : > { %264 = vmatpush1.bf16.msra.mxu0 %v225_v15 }
  0x20   : > { %265 = vmatprep.subr.bf16.mxu0 %v452_v0 }
  0x23   : > { %266 = vmatpush1.bf16.msra.mxu0 %v224_v18 }
  0x24   : > { %267 = vmatprep.subr.bf16.mxu0 %v452_v0 }
  0x27   : > { %268 = vmatpush1.bf16.msra.mxu0 %v223_v21 }
  0x28   : > { %269 = vmatprep.subr.bf16.mxu0 %v452_v0 }
  0x2b   : > { %270 = vmatpush1.bf16.msra.mxu0 %v222_v24 }
  0x2c   : > { %271 = vmatprep.subr.bf16.mxu0 %v452_v0 }
  0x2f   : > { %272 = vmatpush1.bf16.msra.mxu0 %v221_v27 }
  0x30   : > { %287 = vmatprep.subr.bf16.mxu0 %v452_v0 }
  0x33   : > { %288 = vmatpush2.bf16.msra.mxu0 %v229_v30 }
  0x36   : > { %290 = vmatmul.mubr.bf16.vlgmr.msra.gmra.mxu0 %v425_v31 }
  0x89   : > { %v237_v32 = vpop.permute.xlu0 %236 }
  0x8d   : > { %v242_v36 = vpop.permute.xlu0 %241 }
  0xf6   : > { %v291_v33 = vpop.f32.mrf.mxu0 }
  0xf7   : > { %v292_v34 = vadd.f32 %v291_v33, %v237_v32 }
  0xf8   : > { %v293_v35 = vpop.f32.mrf.mxu0 }
  0xf9   : > { %299 = vst.msk [vmem:[%s201_s4] sm:$0xff] %vm298_vm1, %v292_v34 }
  0xfa   : > { %v294_v37 = vpop.f32.mrf.mxu0 }
  0xfb   : > { %v295_v38 = vadd.f32 %v294_v37, %v242_v36 }
  0xfc   : > { %v296_v39 = vpop.f32.mrf.mxu0 }
  0xfd   : > { %300 = vst.msk [vmem:[%s201_s4 + $0x8] sm:$0xff] %vm298_vm1, %v295_v38 }
  0xfe PF: > { %s13_s14 = sadd.s32 1, %s450_s14   ;;  %s546_s12 = smov %s446_s13 }
  0xff   : > { %p10_p5 = scmp.ge.s32.totalorder %s13_s14, 4   ;;  %s547_s13 = smov %s549_s15 }
 0x101   :  { %12 = sbr.rel (!%p10_p5) target bundleno = 2 (0x2), region = 62 }

// kernel: esa_forward.7
= control target key start
LH: loop header
LB: loop body
LE: loop exit
PB: predicated region body
PF: predicated region fallthrough
CT: control target
= control target key end

     0   :  { %s1813_s24 = smov 0   ;;  %s1815_s25 = smov 0   ;;  %s2342_s0 = inlined_call_operand.vmem [shape: f32[2,52,1024], index: 0, kind: input, shape index: {}]   ;;  %s2343_s1 = inlined_call_operand.vmem [shape: f32[9,1024], index: 1, kind: input, shape index: {}]   ;;  %s2344_s2 = inlined_call_operand.vmem [shape: f32[2,16,9], index: 2, kind: input, shape index: {}]   ;;  %s2345_s3 = inlined_call_operand.vmem [shape: bf16[16,52], index: 3, kind: input, shape index: {}]   ;;  %s2346_s4 = inlined_call_operand.vmem [shape: f32[16,1], index: 4, kind: input, shape index: {}]   ;;  %s2347_s5 = inlined_call_operand.vmem [shape: bf16[52,16], index: 5, kind: input, shape index: {}]   ;;  %s2348_s6 = inlined_call_operand.vmem [shape: f32[52,1], index: 6, kind: input, shape index: {}]   ;;  %s2349_s7 = inlined_call_operand.vmem [shape: f32[2,52,1024], index: 7, kind: output, shape index: {}]  }
   0x1   :  { %s1817_s26 = smov 0   ;;  %s1819_s27 = smov 0  }
   0x2   :  { %s1821_s28 = smov 0   ;;  %s1823_s29 = smov 0  }
   0x3   :  { %s1825_s30 = smov 0   ;;  %s1827_s8 = smov 0  }
   0x4   :  { %s1829_s9 = smov 0  }
   0x5 LB: > { %s1430_s10 = sadd.s32 4294967295, %s1769_s9   ;;  %s26_s11 = sadd.s32 1, %s1761_s30  ;;  %s1769_s9 = sphi %s1829_s9, %s17_s9   ;;  %s1765_s8 = sphi %s1827_s8, %s2366_s8   ;;  %s1761_s30 = sphi %s1825_s30, %s2365_s30   ;;  %s1757_s29 = sphi %s1823_s29, %s2364_s29   ;;  %s1753_s28 = sphi %s1821_s28, %s2363_s28   ;;  %s1749_s27 = sphi %s1819_s27, %s2362_s27   ;;  %s1745_s26 = sphi %s1817_s26, %s2361_s26   ;;  %s1741_s25 = sphi %s1815_s25, %s2360_s25   ;;  %s1737_s24 = sphi %s1813_s24, %s2359_s24  }
   0x6   : > { %p27_p0 = scmp.ge.s32.totalorder %s26_s11, 2  ;;  %s29_s12 = sadd.s32 1, %s1765_s8 }
   0x7   : > { %s38_s13 = sadd.s32 1, %s1749_s27  ;;  %p45_p1 = scmp.ne.s32.totalorder %s1749_s27, %s1745_s26 }
   0x8   : > { %s2368_s11 = smov (%p27_p0, %s26_s11), 0  ;;  %s2370_s12 = smov (!%p27_p0, %s29_s12), %s1765_s8 }
   0x9   : > { %2352 = sst [smem:[#allocation5_spill]] %s2368_s11  ;;  %s34_s14 = ssub.s32 %s1761_s30, %s2368_s11 }
   0xa   : > { %p46_p2 = scmp.eq.s32.totalorder %s1769_s9, 0  ;;  %p31_p3 = scmp.ge.s32.totalorder %s2370_s12, 2 }
   0xb   : > { %p62_p4 = scmp.eq.s32.totalorder %s34_s14, 0  ;;  %s64_s16 = sadd.s32 1, %s1741_s25 }
   0xc   : > { %p1873_p5 = por %p46_p2, %p45_p1  ;;  %s2372_s12 = smov (%p31_p3, %s2370_s12), 0 }
   0xd   : > { %2354 = sst [smem:[#allocation6_spill]] %s2372_s12  ;;  %s33_s18 = ssub.s32 %s1765_s8, %s2372_s12 }
   0xe   : > { %s1881_s17 = scalar_select %p62_p4, %s1741_s25, %s64_s16  }
   0xf   : > { %p71_p6 = scmp.ne.s32.totalorder %s1741_s25, %s1737_s24  ;;  %s35_s19 = sor.u32 %s34_s14, %s33_s18 }
  0x10   : > { %p213_p7 = scmp.eq.s32.totalorder %s1430_s10, 3  ;;  %p36_p8 = scmp.eq.s32.totalorder %s35_s19, 0 }
  0x11   : > { %p1887_p9 = por %p71_p6, %p46_p2  ;;  %p1433_p11 = scmp.ge.s32.totalorder %s1769_s9, 4 }
  0x12   : > { %p1894_p10 = por %p213_p7, %p45_p1 }
  0x13   : > { %s1899_s22 = scalar_select %p36_p8, %s1749_s27, %s38_s13  }
  0x14   : > { %247 = sbr.rel (%p1433_p11) target bundleno = 55 (0x37), region = 32 }
  0x19   : > { %250 = sbr.rel (!%p1873_p5) target bundleno = 47 (0x2f), region = 36  ;;  %s252_s23 = sand.u32 (%p1873_p5), 1, %s1749_s27  }
  0x1a   : > { %s1502_s10 = smul.u32 (%p1873_p5), 224, %s252_s23  ;;  %s1434_s14 = sshll.u32 (%p1873_p5), %s1761_s30, 2 }
  0x1b   : > { %s1503_s16 = smul.u32 (%p1873_p5), 56, %s1765_s8 }
  0x1c   : > { %s1915_s15 = scalar_lea.vmem (%p1873_p5), [#allocation2], %s1502_s10 }
  0x1d   : > { %s257_s18 = sadd.s32 (%p1873_p5), %s1503_s16, %s1434_s14 }
  0x1e   : > { %s1435_s19 = sshll.u32 %s257_s18, 3 }
  0x1f   : > { %s1910_s13 = scalar_lea.vmem %s2342_s0, %s1435_s19 }
  0x20   : > { %v272_v0 = vld [vmem:[%s1910_s13] sm:$0xff]  ;;  %v274_v1 = vld [vmem:[%s1910_s13 + $0x8] sm:$0xff]  ;;  %v276_v2 = vld [vmem:[%s1910_s13 + $0x10] sm:$0xff] }
  0x21   : > { %273 = vst [vmem:[%s1915_s15] sm:$0xff] %v272_v0  ;;  %275 = vst [vmem:[%s1915_s15 + $0x8] sm:$0xff] %v274_v1  ;;  %v278_v3 = vld [vmem:[%s1910_s13 + $0x18] sm:$0xff]  ;;  %v280_v4 = vld [vmem:[%s1910_s13 + $0x40] sm:$0xff] }
  0x22   : > { %277 = vst [vmem:[%s1915_s15 + $0x10] sm:$0xff] %v276_v2  ;;  %v282_v5 = vld [vmem:[%s1910_s13 + $0x48] sm:$0xff]  ;;  %279 = vst [vmem:[%s1915_s15 + $0x18] sm:$0xff] %v278_v3  ;;  %v284_v6 = vld [vmem:[%s1910_s13 + $0x50] sm:$0xff] }
  0x23   : > { %281 = vst [vmem:[%s1915_s15 + $0x20] sm:$0xff] %v280_v4  ;;  %283 = vst [vmem:[%s1915_s15 + $0x28] sm:$0xff] %v282_v5  ;;  %v286_v7 = vld [vmem:[%s1910_s13 + $0x58] sm:$0xff]  ;;  %v288_v8 = vld [vmem:[%s1910_s13 + $0x80] sm:$0xff] }
  0x24   : > { %285 = vst [vmem:[%s1915_s15 + $0x30] sm:$0xff] %v284_v6  ;;  %287 = vst [vmem:[%s1915_s15 + $0x38] sm:$0xff] %v286_v7  ;;  %v290_v9 = vld [vmem:[%s1910_s13 + $0x88] sm:$0xff]  ;;  %v292_v10 = vld [vmem:[%s1910_s13 + $0x90] sm:$0xff] }
  0x25   : > { %289 = vst [vmem:[%s1915_s15 + $0x40] sm:$0xff] %v288_v8  ;;  %v294_v11 = vld [vmem:[%s1910_s13 + $0x98] sm:$0xff]  ;;  %291 = vst [vmem:[%s1915_s15 + $0x48] sm:$0xff] %v290_v9  ;;  %v296_v12 = vld [vmem:[%s1910_s13 + $0xc0] sm:$0xff] }
  0x26   : > { %293 = vst [vmem:[%s1915_s15 + $0x50] sm:$0xff] %v292_v10  ;;  %295 = vst [vmem:[%s1915_s15 + $0x58] sm:$0xff] %v294_v11  ;;  %v298_v13 = vld [vmem:[%s1910_s13 + $0xc8] sm:$0xff]  ;;  %v300_v14 = vld [vmem:[%s1910_s13 + $0xd0] sm:$0xff] }
  0x27   : > { %297 = vst [vmem:[%s1915_s15 + $0x60] sm:$0xff] %v296_v12  ;;  %299 = vst [vmem:[%s1915_s15 + $0x68] sm:$0xff] %v298_v13  ;;  %v302_v15 = vld [vmem:[%s1910_s13 + $0xd8] sm:$0xff]  ;;  %v304_v16 = vld [vmem:[%s1910_s13 + $0x100] sm:$0xff] }
  0x28   : > { %301 = vst [vmem:[%s1915_s15 + $0x70] sm:$0xff] %v300_v14  ;;  %v306_v17 = vld [vmem:[%s1910_s13 + $0x108] sm:$0xff]  ;;  %303 = vst [vmem:[%s1915_s15 + $0x78] sm:$0xff] %v302_v15  ;;  %v308_v18 = vld [vmem:[%s1910_s13 + $0x110] sm:$0xff] }
  0x29   : > { %305 = vst [vmem:[%s1915_s15 + $0x80] sm:$0xff] %v304_v16  ;;  %307 = vst [vmem:[%s1915_s15 + $0x88] sm:$0xff] %v306_v17  ;;  %v310_v19 = vld [vmem:[%s1910_s13 + $0x118] sm:$0xff]  ;;  %v312_v20 = vld [vmem:[%s1910_s13 + $0x140] sm:$0xff] }
  0x2a   : > { %309 = vst [vmem:[%s1915_s15 + $0x90] sm:$0xff] %v308_v18  ;;  %311 = vst [vmem:[%s1915_s15 + $0x98] sm:$0xff] %v310_v19  ;;  %v314_v21 = vld [vmem:[%s1910_s13 + $0x148] sm:$0xff]  ;;  %v316_v22 = vld [vmem:[%s1910_s13 + $0x150] sm:$0xff] }
  0x2b   : > { %313 = vst [vmem:[%s1915_s15 + $0xa0] sm:$0xff] %v312_v20  ;;  %v318_v23 = vld [vmem:[%s1910_s13 + $0x158] sm:$0xff]  ;;  %315 = vst [vmem:[%s1915_s15 + $0xa8] sm:$0xff] %v314_v21  ;;  %v320_v24 = vld [vmem:[%s1910_s13 + $0x180] sm:$0xff] }
  0x2c   : > { %317 = vst [vmem:[%s1915_s15 + $0xb0] sm:$0xff] %v316_v22  ;;  %319 = vst [vmem:[%s1915_s15 + $0xb8] sm:$0xff] %v318_v23  ;;  %v322_v25 = vld [vmem:[%s1910_s13 + $0x188] sm:$0xff]  ;;  %v324_v26 = vld [vmem:[%s1910_s13 + $0x190] sm:$0xff] }
  0x2d   : > { %321 = vst [vmem:[%s1915_s15 + $0xc0] sm:$0xff] %v320_v24  ;;  %323 = vst [vmem:[%s1915_s15 + $0xc8] sm:$0xff] %v322_v25  ;;  %v326_v27 = vld [vmem:[%s1910_s13 + $0x198] sm:$0xff] }
  0x2e   : > { %325 = vst [vmem:[%s1915_s15 + $0xd0] sm:$0xff] %v324_v26  ;;  %327 = vst [vmem:[%s1915_s15 + $0xd8] sm:$0xff] %v326_v27 }
  0x2f PF: > { %333 = sbr.rel (!%p1887_p9) target bundleno = 55 (0x37), region = 59  ;;  %s335_s11 = sand.u32 (%p1887_p9), 1, %s1741_s25  }
  0x30   : > { %s1500_s12 = sshll.u32 (%p1887_p9), %s1761_s30, 5  ;;  %s1436_s23 = sshll.u32 (%p1887_p9), %s335_s11, 6 }
  0x31   : > { %s340_s16 = scalar_lea.vmem (%p1887_p9), %s2343_s1, %s1500_s12  ;;  %s337_s18 = scalar_lea.vmem (%p1887_p9), [#allocation3], %s1436_s23 }
  0x32   : > { %v353_v28 = vld [vmem:[%s340_s16] sm:$0xff] (%p1887_p9)  ;;  %v355_v29 = vld [vmem:[%s340_s16 + $0x8] sm:$0xff] (%p1887_p9)  ;;  %v357_v30 = vld [vmem:[%s340_s16 + $0x10] sm:$0xff] (%p1887_p9) }
  0x33   : > { %354 = vst [vmem:[%s337_s18] sm:$0xff] (%p1887_p9), %v353_v28  ;;  %356 = vst [vmem:[%s337_s18 + $0x8] sm:$0xff] (%p1887_p9), %v355_v29  ;;  %v359_v31 = vld [vmem:[%s340_s16 + $0x18] sm:$0xff] (%p1887_p9)  ;;  %v361_v32 = vld [vmem:[%s340_s16 + $0x40] sm:$0xff] (%p1887_p9) }
  0x34   : > { %358 = vst [vmem:[%s337_s18 + $0x10] sm:$0xff] %v357_v30  ;;  %v363_v33 = vld [vmem:[%s340_s16 + $0x48] sm:$0xff]  ;;  %360 = vst [vmem:[%s337_s18 + $0x18] sm:$0xff] %v359_v31  ;;  %v365_v34 = vld [vmem:[%s340_s16 + $0x50] sm:$0xff] }
  0x35   : > { %362 = vst [vmem:[%s337_s18 + $0x20] sm:$0xff] %v361_v32  ;;  %364 = vst [vmem:[%s337_s18 + $0x28] sm:$0xff] %v363_v33  ;;  %v367_v35 = vld [vmem:[%s340_s16 + $0x58] sm:$0xff] }
  0x36   : > { %366 = vst [vmem:[%s337_s18 + $0x30] sm:$0xff] %v365_v34  ;;  %368 = vst [vmem:[%s337_s18 + $0x38] sm:$0xff] %v367_v35 }
  0x37 PF: > { %p1439_p12 = scmp.ge.s32.totalorder %s1769_s9, 1  ;;  %p381_p13 = scmp.lt.s32.totalorder %s1769_s9, 5 }
  0x39   : > { %p382_p0 = pnand %p1439_p12, %p381_p13 }
  0x3a   : > { %s388_s20 = sand.u32 (!%p382_p0), 1, %s1745_s26   ;;  %s395_s23 = sand.u32 (!%p382_p0), 1, %s1737_s24  }
  0x3b   : > { %385 = sbr.rel (%p382_p0) target bundleno = 580 (0x244), region = 86  ;;  %s1440_s24 = sshll.u32 (!%p382_p0), %s395_s23, 6 }
  0x3c   : > { %s1980_s19 = smul.u32 (!%p382_p0), 224, %s388_s20  ;;  %p436_p1 = scmp.lt.s32.totalorder (!%p382_p0), %s1757_s29, 1 }
  0x3d   : > { %s397_s15 = scalar_lea.vmem (!%p382_p0), [#allocation3], %s1440_s24 }
  0x3e   : > { %s1993_s12 = scalar_lea.vmem (!%p382_p0), [#allocation2], %s1980_s19 }
  0x40   : > { %v1771_v36 = vmov 0   ;;  %v489_v37 = vld [vmem:[%s2346_s4] sm:$0xff]  ;;  %vm510_vm0 = vcmask 1041408   ;;  %v490_v38 = vld [vmem:[%s2346_s4 + $0x8] sm:$0xff]  ;;  %v1999_v40 = vld [vmem:[%s1993_s12 + $0xd8] sm:$0xf] }
  0x41   : > { %555 = vmatprep.mubr.bf16.mxu0 %v1771_v36  ;;  %598 = vmatprep.mubr.bf16.mxu1 %v1771_v36  ;;  %v1996_v39 = vld [vmem:[%s1993_s12 + $0xc8] sm:$0xf]  ;;  %v2002_v41 = vld [vmem:[%s1993_s12 + $0xc0] sm:$0xf]  ;;  %v488_v43 = vpack.c.bf16 %v1999_v40, %v1999_v40  ;;  %v2011_v45 = vld [vmem:[%s1993_s12 + $0xd0] sm:$0xf] }
  0x42   : > { %1580 = vset.pattern.permute.xlu0 %v1771_v36  ;;  %1581 = vset.pattern.permute.xlu1 %v1771_v36  ;;  %v486_v42 = vpack.c.bf16 %v1996_v39, %v1996_v39  ;;  %v485_v44 = vpack.c.bf16 %v2002_v41, %v2002_v41  ;;  %v2014_v46 = vld [vmem:[%s1993_s12 + $0x88] sm:$0xff]  ;;  %v487_v48 = vpack.c.bf16 %v2011_v45, %v2011_v45  ;;  %v2024_v50 = vld [vmem:[%s1993_s12 + $0x98] sm:$0xff]  ;;  %v2030_v52 = vld [vmem:[%s1993_s12 + $0x80] sm:$0xff]  ;;  %vm626_vm1 = vcmask 1040384   ;;  %s437_s11 = scalar_select %p436_p1, %s1757_s29, 1 }
  0x43   : > { %493 = vperm.xlu0 %1580, %v489_v37   ;;  %v2017_v47 = vld [vmem:[%s1993_s12 + $0xa8] sm:$0xff]  ;;  %v2027_v51 = vld [vmem:[%s1993_s12 + $0xb8] sm:$0xff]  ;;  %1446 = vmatprep.subr.msk.bf16.mxu1 %vm510_vm0, %v488_v43  ;;  %v2038_v55 = vld [vmem:[%s1993_s12 + $0xa0] sm:$0xff]  ;;  %vm506_vm2 = vcmask 424960   ;;  %v1772_v33 = vmov 0.0   ;;  %vm619_vm3 = vcmask 72704  }
  0x44   : > { %v482_v49 = vpack.c.bf16 %v2017_v47, %v2014_v46  ;;  %1444 = vmatprep.subr.msk.bf16.mxu0 %vm510_vm0, %v486_v42  ;;  %v512_v53 = vsel %vm510_vm0, %v485_v44, 0  ;;  %v484_v54 = vpack.c.bf16 %v2027_v51, %v2024_v50  ;;  %v2041_v56 = vld [vmem:[%s1993_s12 + $0x90] sm:$0xff]  ;;  %v518_v59 = vsel %vm510_vm0, %v487_v48, 0  ;;  %v2054_v61 = vld [vmem:[%s1993_s12 + $0x48] sm:$0xff]  ;;  %v2060_v63 = vld [vmem:[%s1993_s12 + $0x58] sm:$0xff]  ;;  %s1501_s23 = sshll.u32 %s437_s11, 4 }
  0x45   : > { %v2044_v57 = vld [vmem:[%s1993_s12 + $0xb0] sm:$0xff]  ;;  %532 = vmatpush1.bf16.msra.mxu0 %v512_v53  ;;  %v481_v60 = vpack.c.bf16 %v2038_v55, %v2030_v52  ;;  %v2057_v62 = vld [vmem:[%s1993_s12 + $0x68] sm:$0xff]  ;;  %575 = vmatpush1.bf16.msra.mxu1 %v518_v59  ;;  %v2067_v2 = vld [vmem:[%s1993_s12 + $0x78] sm:$0xff]  ;;  %s440_s24 = scalar_lea.vmem %s2344_s2, %s1501_s23  ;;  %vm864_vm4 = vcmask 130048   ;;  %s1505_s11 = smul.u32 (%p1894_p10), 56, %s1757_s29 }
  0x46   : > { %v806_v58 = vld [vmem:[%s2348_s6 + $0x10] sm:$0xff]  ;;  %533 = vmatprep.subr.bf16.mxu0 %v482_v49  ;;  %v483_v0 = vpack.c.bf16 %v2044_v57, %v2041_v56  ;;  %v478_v1 = vpack.c.bf16 %v2057_v62, %v2054_v61  ;;  %v2070_v3 = vld [vmem:[%s1993_s12 + $0x40] sm:$0xff]  ;;  %576 = vmatprep.subr.bf16.mxu1 %v484_v54  ;;  %v480_v5 = vpack.c.bf16 %v2067_v2, %v2060_v63  ;;  %v2084_v8 = vld [vmem:[%s1993_s12 + $0x8] sm:$0xff] }
  0x47   : > { %498 = vperm.xlu0 %1580, %v490_v38   ;;  %v2073_v4 = vld [vmem:[%s1993_s12 + $0x60] sm:$0xff]  ;;  %v2078_v6 = vld [vmem:[%s1993_s12 + $0x50] sm:$0xff]  ;;  %v2087_v9 = vld [vmem:[%s1993_s12 + $0x28] sm:$0xff] }
  0x48   : > { %v2081_v7 = vld [vmem:[%s1993_s12 + $0x70] sm:$0xff]  ;;  %v2090_v10 = vld [vmem:[%s1993_s12 + $0x18] sm:$0xff]  ;;  %v477_v12 = vpack.c.bf16 %v2073_v4, %v2070_v3  ;;  %v474_v14 = vpack.c.bf16 %v2087_v9, %v2084_v8  ;;  %v2103_v15 = vld [vmem:[%s1993_s12] sm:$0xff] }
  0x49   : > { %v2093_v11 = vld [vmem:[%s1993_s12 + $0x38] sm:$0xff]  ;;  %534 = vmatpush1.bf16.msra.mxu0 %v481_v60  ;;  %577 = vmatpush1.bf16.msra.mxu1 %v483_v0  ;;  %v479_v13 = vpack.c.bf16 %v2081_v7, %v2078_v6  ;;  %v2106_v16 = vld [vmem:[%s1993_s12 + $0x20] sm:$0xff]  ;;  %v2114_v19 = vld [vmem:[%s1993_s12 + $0x10] sm:$0xff] }
  0x4a   : > { %535 = vmatprep.subr.bf16.mxu0 %v478_v1  ;;  %v808_v17 = vld [vmem:[%s2348_s6 + $0x20] sm:$0xff]  ;;  %578 = vmatprep.subr.bf16.mxu1 %v480_v5  ;;  %v476_v18 = vpack.c.bf16 %v2093_v11, %v2090_v10  ;;  %v2117_v20 = vld [vmem:[%s1993_s12 + $0x30] sm:$0xff]  ;;  %v473_v22 = vpack.c.bf16 %v2106_v16, %v2103_v15  ;;  %v616_v23 = vld [vmem:[%s397_s15 + $0x28] sm:$0x1] }
  0x4b   : > { %823 = vperm.xlu0 %1580, %v806_v58   ;;  %v810_v21 = vld [vmem:[%s2348_s6 + $0x30] sm:$0xf]  ;;  %v475_v24 = vpack.c.bf16 %v2117_v20, %v2114_v19  ;;  %v1582_v25 = vld [vmem:[%s2345_s3] sm:$0xff]   ;;  %v618_v26 = vld [vmem:[%s397_s15 + $0x38] sm:$0x1] }
  0x4c   : > { %v615_v27 = vld [vmem:[%s397_s15 + $0x20] sm:$0x1]  ;;  %v617_v28 = vld [vmem:[%s397_s15 + $0x30] sm:$0x1]  ;;  %v612_v29 = vld [vmem:[%s397_s15 + $0x8] sm:$0xff] }
  0x4d   : > { %536 = vmatpush1.bf16.msra.mxu0 %v477_v12  ;;  %579 = vmatpush1.bf16.msra.mxu1 %v479_v13  ;;  %v614_v30 = vld [vmem:[%s397_s15 + $0x18] sm:$0xff]  ;;  %v611_v31 = vld [vmem:[%s397_s15] sm:$0xff]  ;;  %v613_v32 = vld [vmem:[%s397_s15 + $0x10] sm:$0xff]  ;;  %s2190_s15 = scalar_lea.vmem [#allocation4], %s1980_s19  ;;  %s1496_s19 = sshll.u32 (%p1894_p10), %s1753_s28, 2 }
  0x4e   : > { %537 = vmatprep.subr.bf16.mxu0 %v474_v14  ;;  %580 = vmatprep.subr.bf16.mxu1 %v476_v18  ;;  %v609_v34 = vld [vmem:[%s440_s24] sm:$0xff]  ;;  %v610_v35 = vld [vmem:[%s440_s24 + $0x8] sm:$0xff]  ;;  %v807_v42 = vld [vmem:[%s2348_s6 + $0x18] sm:$0xff]  ;;  %s1252_s21 = sadd.s32 (%p1894_p10), %s1505_s11, %s1496_s19 }
  0x4f   : > { %833 = vperm.xlu0 %1580, %v808_v17   ;;  %v804_v37 = vld [vmem:[%s2348_s6] sm:$0xff]  ;;  %v805_v38 = vld [vmem:[%s2348_s6 + $0x8] sm:$0xff]  ;;  %s1497_s26 = sshll.u32 (%p1894_p10), %s1252_s21, 3 }
  0x50   : > { %813 = vperm.xlu1 %1581, %v804_v37   ;;  %v809_v43 = vld [vmem:[%s2348_s6 + $0x28] sm:$0xff]  ;;  %s2269_s29 = scalar_lea.vmem (%p1894_p10), %s2349_s7, %s1497_s26 }
  0x51   : > { %538 = vmatpush1.bf16.msra.mxu0 %v473_v22  ;;  %581 = vmatpush1.bf16.msra.mxu1 %v475_v24 }
  0x52   : > { %1448 = vmatprep.subr.msk.mxu0 %vm626_vm1, %v616_v23  ;;  %1452 = vmatprep.subr.msk.mxu1 %vm626_vm1, %v618_v26 }
  0x53   : > { %843 = vperm.xlu0 %1580, %v810_v21  }
  0x54   : > { %1445 = vmatmul.mubr.msk.bf16.vlgmr.msra.gmra.mxu0 %vm506_vm2, %v1582_v25  ;;  %1447 = vmatmul.mubr.msk.bf16.vlgmr.msra.gmra.mxu1 %vm506_vm2, %v1582_v25 }
  0x55   : > { %1449 = vmatpush1.msk.msra.mxu0 %vm626_vm1, %v615_v27  ;;  %1453 = vmatpush1.msk.msra.mxu1 %vm626_vm1, %v617_v28 }
  0x56   : > { %669 = vmatprep.subr.mxu0 %v612_v29  ;;  %746 = vmatprep.subr.mxu1 %v614_v30 }
  0x57   : > { %670 = vmatpush1.msra.mxu0 %v611_v31  ;;  %703 = vmatprep.mubr.f32.mxu0 %v1772_v33 }
  0x58   : > { %747 = vmatpush1.msra.mxu1 %v613_v32  ;;  %780 = vmatprep.mubr.f32.mxu1 %v1772_v33 }
  0x59   : > { %818 = vperm.xlu1 %1581, %v805_v38  }
  0x5c   : > { %1450 = vmatmul.mubr.msk.f32.vlgmr.msra.gmra.mxu0 %vm619_vm3, %v609_v34  ;;  %1454 = vmatmul.mubr.msk.f32.vlgmr.msra.gmra.mxu1 %vm619_vm3, %v609_v34 }
  0x5d   : > { %709 = vmatprep.mubr.f32.mxu0 %v1772_v33  ;;  %786 = vmatprep.mubr.f32.mxu1 %v1772_v33 }
  0x5e   : > { %828 = vperm.xlu1 %1581, %v807_v42  }
  0x60   : > { %1451 = vmatmul.mubr.msk.f32.gmra.mxu0 %vm619_vm3, %v610_v35  ;;  %1455 = vmatmul.mubr.msk.f32.gmra.mxu1 %vm619_vm3, %v610_v35 }
  0x61   : > { %909 = vmatprep.mubr.bf16.mxu0 %v1771_v36  ;;  %980 = vmatprep.mubr.bf16.mxu1 %v1771_v36 }
  0x62   : > { %838 = vperm.xlu1 %1581, %v809_v43  }
  0xbe   : > { %v494_v58 = vpop.permute.xlu0 %493 }
  0xc2   : > { %v499_v13 = vpop.permute.xlu0 %498 }
 0x114   : > { %v557_v44 = vpop.f32.mrf.mxu0  ;;  %v600_v48 = vpop.f32.mrf.mxu1 }
 0x115   : > { %v558_v25 = vadd.f32 %v557_v44, %v494_v58  ;;  %v601_v30 = vadd.f32 %v600_v48, %v494_v58  ;;  %v1583_v44 = vld [vmem:[%s2347_s5] sm:$0xff]   ;;  %v1584_v48 = vld [vmem:[%s2347_s5 + $0x8] sm:$0xff]  }
 0x116   : > { %v559_v49 = vpop.f32.mrf.mxu0  ;;  %v602_v53 = vpop.f32.mrf.mxu1 }
 0x117   : > { %v560_v21 = vadd.f32 %v559_v49, %v494_v58  ;;  %v603_v26 = vadd.f32 %v602_v53, %v494_v58  ;;  %v1585_v53 = vld [vmem:[%s2347_s5 + $0x10] sm:$0xff]   ;;  %v1586_v58 = vld [vmem:[%s2347_s5 + $0x18] ss:$0 sps:$4 sm:$0x33]  }
 0x118   : > { %v561_v54 = vpop.f32.mrf.mxu0  ;;  %v604_v59 = vpop.f32.mrf.mxu1 }
 0x119   : > { %v562_v17 = vadd.f32 %v561_v54, %v499_v13  ;;  %v605_v22 = vadd.f32 %v604_v59, %v499_v13 }
 0x11a   : > { %v563_v60 = vpop.f32.mrf.mxu0  ;;  %v606_v0 = vpop.f32.mrf.mxu1 }
 0x11b   : > { %v564_v23 = vadd.f32 %v563_v60, %v499_v13  ;;  %v607_v27 = vadd.f32 %v606_v0, %v499_v13  ;;  %v814_v60 = vpop.permute.xlu1 %813 }
 0x11c   : > { %v705_v1 = vpop.f32.mrf.mxu0  ;;  %v782_v5 = vpop.f32.mrf.mxu1 }
 0x11d   : > { %v706_v35 = vadd.f32 %v705_v1, %v558_v25  ;;  %v783_v42 = vadd.f32 %v782_v5, %v601_v30 }
 0x11e   : > { %v707_v12 = vpop.f32.mrf.mxu0  ;;  %v784_v14 = vpop.f32.mrf.mxu1 }
 0x11f   : > { %v708_v31 = vadd.f32 %v707_v12, %v560_v21  ;;  %v785_v37 = vadd.f32 %v784_v14, %v603_v26  ;;  %v819_v14 = vpop.permute.xlu1 %818 }
 0x120   : > { %v711_v18 = vpop.f32.mrf.mxu0  ;;  %v788_v24 = vpop.f32.mrf.mxu1 }
 0x121   : > { %v712_v28 = vadd.f32 %v711_v18, %v562_v17  ;;  %v789_v32 = vadd.f32 %v788_v24, %v605_v22 }
 0x122   : > { %v713_v29 = vpop.f32.mrf.mxu0  ;;  %v790_v34 = vpop.f32.mrf.mxu1 }
 0x123   : > { %v714_v33 = vadd.f32 %v713_v29, %v564_v23  ;;  %v791_v38 = vadd.f32 %v790_v34, %v607_v27  ;;  %v793_v54 = vpack.c.bf16 %v712_v28, %v706_v35  ;;  %v795_v59 = vpack.c.bf16 %v789_v32, %v783_v42 }
 0x125   : > { %v794_v43 = vpack.c.bf16 %v714_v33, %v708_v31  ;;  %v796_v49 = vpack.c.bf16 %v791_v38, %v785_v37  ;;  %v824_v33 = vpop.permute.xlu0 %823 }
 0x127   : > { %891 = vmatprep.subr.bf16.mxu0 %v794_v43  ;;  %962 = vmatprep.subr.bf16.mxu1 %v796_v49 }
 0x128   : > { %892 = vmatpush1.bf16.msra.mxu0 %v793_v54  ;;  %963 = vmatpush1.bf16.msra.mxu1 %v795_v59 }
 0x12b   : > { %1460 = vmatmul.mubr.msk.bf16.vlgmr.msra.gmra.mxu0 %vm864_vm4, %v1583_v44  ;;  %1464 = vmatmul.mubr.msk.bf16.vlgmr.msra.gmra.mxu1 %vm864_vm4, %v1583_v44 }
 0x12c   : > { %919 = vmatprep.mubr.bf16.mxu0 %v1771_v36  ;;  %990 = vmatprep.mubr.bf16.mxu1 %v1771_v36 }
 0x133   : > { %1461 = vmatmul.mubr.msk.bf16.gmra.mxu0 %vm864_vm4, %v1584_v48  ;;  %1465 = vmatmul.mubr.msk.bf16.gmra.mxu1 %vm864_vm4, %v1584_v48 }
 0x134   : > { %929 = vmatprep.mubr.bf16.mxu0 %v1771_v36  ;;  %1000 = vmatprep.mubr.bf16.mxu1 %v1771_v36 }
 0x13b   : > { %1462 = vmatmul.mubr.msk.bf16.gmra.mxu0 %vm864_vm4, %v1585_v53  ;;  %1466 = vmatmul.mubr.msk.bf16.gmra.mxu1 %vm864_vm4, %v1585_v53 }
 0x13c   : > { %939 = vmatprep.mubr.bf16.mxu0 %v1771_v36  ;;  %1010 = vmatprep.mubr.bf16.mxu1 %v1771_v36 }
 0x143   : > { %1463 = vmatmul.mubr.msk.bf16.gmra.mxu0 %vm864_vm4, %v1586_v58  ;;  %1467 = vmatmul.mubr.msk.bf16.gmra.mxu1 %vm864_vm4, %v1586_v58 }
 0x1eb   : > { %v911_v0 = vpop.f32.mrf.mxu0  ;;  %v982_v1 = vpop.f32.mrf.mxu1 }
 0x1ec   : > { %v912_v5 = vadd.f32 %v911_v0, %v814_v60  ;;  %v983_v12 = vadd.f32 %v982_v1, %v814_v60  ;;  %v829_v1 = vpop.permute.xlu1 %828 }
 0x1ed   : > { %v913_v13 = vpop.f32.mrf.mxu0  ;;  %v984_v21 = vpop.f32.mrf.mxu1 }
 0x1ee   : > { %v1468_v17 = vmul.f32 -1.442695, %v912_v5  ;;  %v914_v18 = vadd.f32 %v913_v13, %v814_v60  ;;  %v1470_v22 = vmul.f32 -1.442695, %v983_v12  ;;  %v985_v36 = vadd.f32 %v984_v21, %v814_v60 }
 0x1ef   : > { %v915_v23 = vpop.f32.mrf.mxu0  ;;  %v986_v25 = vpop.f32.mrf.mxu1 }
 0x1f0   : > { %1587 = vpow2.f32 %v1468_v17  ;;  %v1469_v24 = vmul.f32 -1.442695, %v914_v18  ;;  %v916_v26 = vadd.f32 %v915_v23, %v819_v14  ;;  %v1471_v27 = vmul.f32 -1.442695, %v985_v36 }
 0x1f1   : > { %1589 = vpow2.f32 %v1470_v22  ;;  %v987_v28 = vadd.f32 %v986_v25, %v819_v14  ;;  %v917_v29 = vpop.f32.mrf.mxu0  ;;  %v988_v32 = vpop.f32.mrf.mxu1 }
 0x1f2   : > { %1591 = vpow2.f32 %v1469_v24  ;;  %v1472_v30 = vmul.f32 -1.442695, %v916_v26  ;;  %v918_v31 = vadd.f32 %v917_v29, %v819_v14  ;;  %v989_v35 = vadd.f32 %v988_v32, %v819_v14 }
 0x1f3   : > { %1593 = vpow2.f32 %v1471_v27  ;;  %v1474_v34 = vmul.f32 -1.442695, %v987_v28  ;;  %v921_v37 = vpop.f32.mrf.mxu0  ;;  %v992_v43 = vpop.f32.mrf.mxu1 }
 0x1f4   : > { %1595 = vpow2.f32 %v1472_v30  ;;  %v1473_v38 = vmul.f32 -1.442695, %v918_v31  ;;  %v922_v42 = vadd.f32 %v921_v37, %v824_v33  ;;  %v1475_v54 = vmul.f32 -1.442695, %v989_v35 }
 0x1f5   : > { %1597 = vpow2.f32 %v1474_v34  ;;  %v993_v49 = vadd.f32 %v992_v43, %v824_v33  ;;  %v923_v59 = vpop.f32.mrf.mxu0  ;;  %v994_v53 = vpop.f32.mrf.mxu1 }
 0x1f6   : > { %1599 = vpow2.f32 %v1473_v38  ;;  %v1476_v44 = vmul.f32 -1.442695, %v922_v42  ;;  %v924_v48 = vadd.f32 %v923_v59, %v824_v33  ;;  %v995_v60 = vadd.f32 %v994_v53, %v824_v33 }
 0x1f7   : > { %1601 = vpow2.f32 %v1475_v54  ;;  %v1478_v58 = vmul.f32 -1.442695, %v993_v49  ;;  %v925_v0 = vpop.f32.mrf.mxu0  ;;  %v996_v12 = vpop.f32.mrf.mxu1 }
 0x1f8   : > { %1603 = vpow2.f32 %v1476_v44  ;;  %v1477_v5 = vmul.f32 -1.442695, %v924_v48  ;;  %v926_v13 = vadd.f32 %v925_v0, %v829_v1  ;;  %v1479_v14 = vmul.f32 -1.442695, %v995_v60 }
 0x1f9   : > { %1605 = vpow2.f32 %v1478_v58  ;;  %v997_v17 = vadd.f32 %v996_v12, %v829_v1  ;;  %v927_v18 = vpop.f32.mrf.mxu0  ;;  %v998_v36 = vpop.f32.mrf.mxu1 }
 0x1fa   : > { %1607 = vpow2.f32 %v1477_v5  ;;  %v1480_v21 = vmul.f32 -1.442695, %v926_v13  ;;  %v928_v22 = vadd.f32 %v927_v18, %v829_v1  ;;  %v999_v24 = vadd.f32 %v998_v36, %v829_v1 }
 0x1fb   : > { %1609 = vpow2.f32 %v1479_v14  ;;  %v1482_v23 = vmul.f32 -1.442695, %v997_v17  ;;  %v931_v25 = vpop.f32.mrf.mxu0  ;;  %v1002_v27 = vpop.f32.mrf.mxu1 }
 0x1fc   : > { %1611 = vpow2.f32 %v1480_v21  ;;  %v1481_v26 = vmul.f32 -1.442695, %v928_v22  ;;  %v1483_v29 = vmul.f32 -1.442695, %v999_v24 }
 0x1fd   : > { %v1588_v28 = vpop.eup %1587  ;;  %1613 = vpow2.f32 %v1482_v23  ;;  %v933_v30 = vpop.f32.mrf.mxu0 }
 0x1fe   : > { %v1590_v31 = vpop.eup %1589  ;;  %v1103_v32 = vadd.f32 1.0, %v1588_v28  ;;  %1615 = vpow2.f32 %v1481_v26  ;;  %v1004_v33 = vpop.f32.mrf.mxu1 }
 0x1ff   : > { %v1592_v34 = vpop.eup %1591  ;;  %v1105_v35 = vadd.f32 1.0, %v1590_v31  ;;  %1617 = vpow2.f32 %v1483_v29  ;;  %v935_v37 = vpop.f32.mrf.mxu0 }
 0x200   : > { %v1594_v38 = vpop.eup %1593  ;;  %1619 = vrcp.f32 %v1103_v32  ;;  %v1104_v42 = vadd.f32 1.0, %v1592_v34  ;;  %v1006_v43 = vpop.f32.mrf.mxu1 }
 0x201   : > { %v1596_v54 = vpop.eup %1595  ;;  %1621 = vrcp.f32 %v1105_v35  ;;  %v1106_v49 = vadd.f32 1.0, %v1594_v38  ;;  %v937_v59 = vpop.f32.mrf.mxu0 }
 0x202   : > { %v1598_v44 = vpop.eup %1597  ;;  %1623 = vrcp.f32 %v1104_v42  ;;  %v1107_v48 = vadd.f32 1.0, %v1596_v54  ;;  %v1008_v53 = vpop.f32.mrf.mxu1 }
 0x203   : > { %v1600_v58 = vpop.eup %1599  ;;  %1625 = vrcp.f32 %v1106_v49  ;;  %v1109_v60 = vadd.f32 1.0, %v1598_v44  ;;  %v2179_v0 = vpop.f32.mrf.mxu0 }
 0x204   : > { %v1602_v1 = vpop.eup %1601  ;;  %1627 = vrcp.f32 %v1107_v48  ;;  %v1108_v5 = vadd.f32 1.0, %v1600_v58  ;;  %v2181_v12 = vpop.f32.mrf.mxu1 }
 0x205   : > { %v1604_v13 = vpop.eup %1603  ;;  %1629 = vrcp.f32 %v1109_v60  ;;  %v1110_v14 = vadd.f32 1.0, %v1602_v1  ;;  %v2183_v17 = vpop.f32.mrf.mxu0 }
 0x206   : > { %v1606_v18 = vpop.eup %1605  ;;  %1631 = vrcp.f32 %v1108_v5  ;;  %v1111_v21 = vadd.f32 1.0, %v1604_v13  ;;  %v2185_v22 = vpop.f32.mrf.mxu1 }
 0x207   : > { %v1608_v36 = vpop.eup %1607  ;;  %v834_v23 = vpop.permute.xlu0 %833  ;;  %1633 = vrcp.f32 %v1110_v14  ;;  %v1113_v24 = vadd.f32 1.0, %v1606_v18 }
 0x208   : > { %v945_v26 = vpop.f32.mrf.mxu0  ;;  %v1610_v28 = vpop.eup %1609  ;;  %1635 = vrcp.f32 %v1111_v21  ;;  %v1112_v29 = vadd.f32 1.0, %v1608_v36  ;;  %v932_v31 = vadd.f32 %v931_v25, %v834_v23  ;;  %v1003_v38 = vadd.f32 %v1002_v27, %v834_v23 }
 0x209   : > { %v1016_v32 = vpop.f32.mrf.mxu1  ;;  %v1612_v34 = vpop.eup %1611  ;;  %1637 = vrcp.f32 %v1113_v24  ;;  %v1114_v35 = vadd.f32 1.0, %v1610_v28  ;;  %v934_v44 = vadd.f32 %v933_v30, %v834_v23  ;;  %v1005_v1 = vadd.f32 %v1004_v33, %v834_v23 }
 0x20a   : > { %v946_v42 = vpop.f32.mrf.mxu0  ;;  %v1614_v54 = vpop.eup %1613  ;;  %1639 = vrcp.f32 %v1112_v29  ;;  %v1115_v49 = vadd.f32 1.0, %v1612_v34  ;;  %v1484_v25 = vmul.f32 -1.442695, %v932_v31  ;;  %v1486_v36 = vmul.f32 -1.442695, %v1003_v38 }
 0x20b   : > { %v1017_v48 = vpop.f32.mrf.mxu1  ;;  %v1616_v58 = vpop.eup %1615  ;;  %1641 = vrcp.f32 %v1114_v35  ;;  %v1117_v60 = vadd.f32 1.0, %v1614_v54  ;;  %v1485_v28 = vmul.f32 -1.442695, %v934_v44  ;;  %v1487_v34 = vmul.f32 -1.442695, %v1005_v1 }
 0x20c   : > { %v839_v5 = vpop.permute.xlu1 %838  ;;  %v1618_v13 = vpop.eup %1617  ;;  %1643 = vrcp.f32 %v1115_v49  ;;  %v1116_v14 = vadd.f32 1.0, %v1616_v58 }
 0x20d   : > { %v936_v18 = vadd.f32 %v935_v37, %v839_v5  ;;  %v1620_v21 = vpop.eup %1619  ;;  %1645 = vrcp.f32 %v1117_v60  ;;  %v1118_v27 = vadd.f32 1.0, %v1618_v13  ;;  %v1007_v24 = vadd.f32 %v1006_v43, %v839_v5  ;;  %v844_v33 = vpop.permute.xlu0 %843 }
 0x20e   : > { %v1622_v26 = vpop.eup %1621  ;;  %v1187_v30 = vmul.f32 %v1620_v21, %v2103_v15  ;;  %1647 = vrcp.f32 %v1116_v14  ;;  %v938_v29 = vadd.f32 %v937_v59, %v839_v5  ;;  %v1009_v31 = vadd.f32 %v1008_v53, %v839_v5 }
 0x20f   : > { %v1624_v32 = vpop.eup %1623  ;;  %v1189_v23 = vmul.f32 %v1622_v26, %v2114_v19  ;;  %1649 = vrcp.f32 %v1118_v27  ;;  %v1488_v15 = vmul.f32 -1.442695, %v936_v18  ;;  %v942_v59 = vadd.f32 %v2179_v0, %v844_v33 }
 0x210   : > { %v1626_v37 = vpop.eup %1625  ;;  %1215 = vst [vmem:[%s2190_s15] sm:$0xff] %v1187_v30  ;;  %v1188_v43 = vmul.f32 %v1624_v32, %v2084_v8  ;;  %1651 = vpow2.f32 %v1484_v25  ;;  %v1490_v53 = vmul.f32 -1.442695, %v1007_v24  ;;  %v1013_v38 = vadd.f32 %v2181_v12, %v844_v33 }
 0x211   : > { %v1628_v35 = vpop.eup %1627  ;;  %1217 = vst [vmem:[%s2190_s15 + $0x10] sm:$0xff] %v1189_v23  ;;  %v1190_v19 = vmul.f32 %v1626_v37, %v2090_v10  ;;  %1653 = vpow2.f32 %v1486_v36  ;;  %v1489_v8 = vmul.f32 -1.442695, %v938_v29  ;;  %v944_v49 = vadd.f32 %v2183_v17, %v844_v33 }
 0x212   : > { %v1630_v42 = vpop.eup %1629  ;;  %1216 = vst [vmem:[%s2190_s15 + $0x8] sm:$0xff] %v1188_v43  ;;  %v1191_v54 = vmul.f32 %v1628_v35, %v2106_v16  ;;  %1655 = vpow2.f32 %v1485_v28  ;;  %v1491_v10 = vmul.f32 -1.442695, %v1009_v31  ;;  %v1015_v48 = vadd.f32 %v2185_v22, %v844_v33 }
 0x213   : > { %v1632_v44 = vpop.eup %1631  ;;  %1218 = vst [vmem:[%s2190_s15 + $0x18] sm:$0xff] %v1190_v19  ;;  %v1193_v0 = vmul.f32 %v1630_v42, %v2117_v20  ;;  %1657 = vpow2.f32 %v1487_v34  ;;  %v1492_v16 = vmul.f32 -1.442695, %v942_v59  ;;  %v1494_v1 = vmul.f32 -1.442695, %v1013_v38 }
 0x214   : > { %v1634_v58 = vpop.eup %1633  ;;  %1219 = vst [vmem:[%s2190_s15 + $0x20] sm:$0xff] %v1191_v54  ;;  %v1192_v12 = vmul.f32 %v1632_v44, %v2087_v9  ;;  %1659 = vpow2.f32 %v1488_v15  ;;  %v1493_v22 = vmul.f32 -1.442695, %v944_v49  ;;  %v1495_v14 = vmul.f32 -1.442695, %v1015_v48 }
 0x215   : > { %v1636_v60 = vpop.eup %1635  ;;  %1221 = vst [vmem:[%s2190_s15 + $0x30] sm:$0xff] %v1193_v0  ;;  %v1194_v17 = vmul.f32 %v1634_v58, %v2093_v11  ;;  %1661 = vpow2.f32 %v1490_v53 }
 0x216   : > { %v1638_v20 = vpop.eup %1637  ;;  %1220 = vst [vmem:[%s2190_s15 + $0x28] sm:$0xff] %v1192_v12  ;;  %v1195_v5 = vmul.f32 %v1636_v60, %v2070_v3  ;;  %1663 = vpow2.f32 %v1489_v8 }
 0x217   : > { %v1640_v13 = vpop.eup %1639  ;;  %1222 = vst [vmem:[%s2190_s15 + $0x38] sm:$0xff] %v1194_v17  ;;  %v1197_v9 = vmul.f32 %v1638_v20, %v2078_v6  ;;  %1665 = vpow2.f32 %v1491_v10 }
 0x218   : > { %v1642_v25 = vpop.eup %1641  ;;  %1223 = vst [vmem:[%s2190_s15 + $0x40] sm:$0xff] %v1195_v5  ;;  %v1196_v11 = vmul.f32 %v1640_v13, %v2054_v61  ;;  %1667 = vpow2.f32 %v1492_v16 }
 0x219   : > { %v1644_v18 = vpop.eup %1643  ;;  %1225 = vst [vmem:[%s2190_s15 + $0x50] sm:$0xff] %v1197_v9  ;;  %v1198_v3 = vmul.f32 %v1642_v25, %v2060_v63  ;;  %1669 = vpow2.f32 %v1494_v1 }
 0x21a   : > { %v1646_v21 = vpop.eup %1645  ;;  %1224 = vst [vmem:[%s2190_s15 + $0x48] sm:$0xff] %v1196_v11  ;;  %v1199_v6 = vmul.f32 %v1644_v18, %v2073_v4  ;;  %1671 = vpow2.f32 %v1493_v22 }
 0x21b   : > { %v1648_v27 = vpop.eup %1647  ;;  %1226 = vst [vmem:[%s2190_s15 + $0x58] sm:$0xff] %v1198_v3  ;;  %v1201_v36 = vmul.f32 %v1646_v21, %v2081_v7  ;;  %1673 = vpow2.f32 %v1495_v14 }
 0x21c   : > { %v1650_v61 = vpop.eup %1649  ;;  %1227 = vst [vmem:[%s2190_s15 + $0x60] sm:$0xff] %v1199_v6  ;;  %v1200_v24 = vmul.f32 %v1648_v27, %v2057_v62  ;;  %v1279_v11 = vld [vmem:[%s2190_s15 + $0x30] sm:$0xff] (%p1894_p10) }
 0x21d   : > { %v1652_v26 = vpop.eup %1651  ;;  %1229 = vst [vmem:[%s2190_s15 + $0x70] sm:$0xff] %v1201_v36  ;;  %v1202_v63 = vmul.f32 %v1650_v61, %v2067_v2  ;;  %v1277_v25 = vld [vmem:[%s2190_s15 + $0x28] sm:$0xff] (%p1894_p10)  ;;  %1280 = vst [vmem:[%s2269_s29 + $0x50] sm:$0xff] (%p1894_p10), %v1279_v11 }
 0x21e   : > { %v1654_v30 = vpop.eup %1653  ;;  %1228 = vst [vmem:[%s2190_s15 + $0x68] sm:$0xff] %v1200_v24  ;;  %v1119_v28 = vadd.f32 1.0, %v1652_v26  ;;  %v1281_v18 = vld [vmem:[%s2190_s15 + $0x38] sm:$0xff] (%p1894_p10)  ;;  %1278 = vst [vmem:[%s2269_s29 + $0x48] sm:$0xff] (%p1894_p10), %v1277_v25 }
 0x21f   : > { %v1656_v29 = vpop.eup %1655  ;;  %1230 = vst [vmem:[%s2190_s15 + $0x78] sm:$0xff] %v1202_v63  ;;  %v1121_v4 = vadd.f32 1.0, %v1654_v30  ;;  %v1283_v3 = vld [vmem:[%s2190_s15 + $0x40] sm:$0xff] (%p1894_p10)  ;;  %1282 = vst [vmem:[%s2269_s29 + $0x58] sm:$0xff] (%p1894_p10), %v1281_v18 }
 0x220   : > { %v1658_v32 = vpop.eup %1657  ;;  %1675 = vrcp.f32 %v1119_v28  ;;  %v1120_v33 = vadd.f32 1.0, %v1656_v29  ;;  %v1287_v6 = vld [vmem:[%s2190_s15 + $0x50] sm:$0xff] (%p1894_p10)  ;;  %1284 = vst [vmem:[%s2269_s29 + $0x80] sm:$0xff] (%p1894_p10), %v1283_v3 }
 0x221   : > { %v1660_v23 = vpop.eup %1659  ;;  %1677 = vrcp.f32 %v1121_v4  ;;  %v1122_v7 = vadd.f32 1.0, %v1658_v32  ;;  %v1285_v21 = vld [vmem:[%s2190_s15 + $0x48] sm:$0xff] (%p1894_p10)  ;;  %1288 = vst [vmem:[%s2269_s29 + $0x90] sm:$0xff] (%p1894_p10), %v1287_v6 }
 0x222   : > { %v1662_v34 = vpop.eup %1661  ;;  %1679 = vrcp.f32 %v1120_v33  ;;  %v1123_v31 = vadd.f32 1.0, %v1660_v23  ;;  %v1289_v27 = vld [vmem:[%s2190_s15 + $0x58] sm:$0xff] (%p1894_p10)  ;;  %1286 = vst [vmem:[%s2269_s29 + $0x88] sm:$0xff] (%p1894_p10), %v1285_v21 }
 0x223   : > { %v1664_v62 = vpop.eup %1663  ;;  %1681 = vrcp.f32 %v1122_v7  ;;  %v1125_v37 = vadd.f32 1.0, %v1662_v34  ;;  %v1291_v36 = vld [vmem:[%s2190_s15 + $0x60] sm:$0xff] (%p1894_p10)  ;;  %1290 = vst [vmem:[%s2269_s29 + $0x98] sm:$0xff] (%p1894_p10), %v1289_v27 }
 0x224   : > { %v1666_v43 = vpop.eup %1665  ;;  %1683 = vrcp.f32 %v1123_v31  ;;  %v1124_v2 = vadd.f32 1.0, %v1664_v62  ;;  %v1295_v24 = vld [vmem:[%s2190_s15 + $0x70] sm:$0xff] (%p1894_p10)  ;;  %1292 = vst [vmem:[%s2269_s29 + $0xc0] sm:$0xff] (%p1894_p10), %v1291_v36 }
 0x225   : > { %v1668_v15 = vpop.eup %1667  ;;  %1685 = vrcp.f32 %v1125_v37  ;;  %v1126_v59 = vadd.f32 1.0, %v1666_v43  ;;  %v1293_v61 = vld [vmem:[%s2190_s15 + $0x68] sm:$0xff] (%p1894_p10)  ;;  %1296 = vst [vmem:[%s2269_s29 + $0xd0] sm:$0xff] (%p1894_p10), %v1295_v24 }
 0x226   : > { %v1670_v35 = vpop.eup %1669  ;;  %1687 = vrcp.f32 %v1124_v2  ;;  %v1127_v19 = vadd.f32 1.0, %v1668_v15  ;;  %1294 = vst [vmem:[%s2269_s29 + $0xc8] sm:$0xff] (%p1894_p10), %v1293_v61  ;;  %v1297_v26 = vld [vmem:[%s2190_s15 + $0x78] sm:$0xff] (%p1894_p10) }
 0x227   : > { %v1672_v53 = vpop.eup %1671  ;;  %1689 = vrcp.f32 %v1126_v59  ;;  %v1129_v38 = vadd.f32 1.0, %v1670_v35  ;;  %1298 = vst [vmem:[%s2269_s29 + $0xd8] sm:$0xff] (%p1894_p10), %v1297_v26 }
 0x228   : > { %v1674_v42 = vpop.eup %1673  ;;  %1691 = vrcp.f32 %v1127_v19  ;;  %v1128_v54 = vadd.f32 1.0, %v1672_v53 }
 0x229   : > { %1693 = vrcp.f32 %v1129_v38  ;;  %v1130_v8 = vadd.f32 1.0, %v1674_v42 }
 0x22a   : > { %1695 = vrcp.f32 %v1128_v54 }
 0x22b   : > { %1697 = vrcp.f32 %v1130_v8 }
 0x22d   : > { %v1676_v49 = vpop.eup %1675 }
 0x22e   : > { %v1678_v44 = vpop.eup %1677  ;;  %v1203_v0 = vmul.f32 %v1676_v49, %v2030_v52 }
 0x22f   : > { %v1680_v10 = vpop.eup %1679  ;;  %v1205_v48 = vmul.f32 %v1678_v44, %v2041_v56 }
 0x230   : > { %v1682_v58 = vpop.eup %1681  ;;  %1231 = vst [vmem:[%s2190_s15 + $0x80] sm:$0xff] %v1203_v0  ;;  %v1204_v12 = vmul.f32 %v1680_v10, %v2014_v46 }
 0x231   : > { %v1684_v16 = vpop.eup %1683  ;;  %1233 = vst [vmem:[%s2190_s15 + $0x90] sm:$0xff] %v1205_v48  ;;  %v1206_v60 = vmul.f32 %v1682_v58, %v2024_v50 }
 0x232   : > { %v1686_v17 = vpop.eup %1685  ;;  %1232 = vst [vmem:[%s2190_s15 + $0x88] sm:$0xff] %v1204_v12  ;;  %v1207_v1 = vmul.f32 %v1684_v16, %v2038_v55 }
 0x233   : > { %v1688_v52 = vpop.eup %1687  ;;  %1234 = vst [vmem:[%s2190_s15 + $0x98] sm:$0xff] %v1206_v60  ;;  %v1209_v56 = vmul.f32 %v1686_v17, %v2044_v57 }
 0x234   : > { %v1690_v20 = vpop.eup %1689  ;;  %1235 = vst [vmem:[%s2190_s15 + $0xa0] sm:$0xff] %v1207_v1  ;;  %v1208_v46 = vmul.f32 %v1688_v52, %v2017_v47 }
 0x235   : > { %v1692_v5 = vpop.eup %1691  ;;  %1237 = vst [vmem:[%s2190_s15 + $0xb0] sm:$0xff] %v1209_v56  ;;  %v1210_v50 = vmul.f32 %v1690_v20, %v2027_v51  ;;  %v1275_v51 = vld [vmem:[%s2190_s15 + $0x20] sm:$0xff] (%p1894_p10) }
 0x236   : > { %v1694_v22 = vpop.eup %1693  ;;  %1236 = vst [vmem:[%s2190_s15 + $0xa8] sm:$0xff] %v1208_v46  ;;  %v1211_v55 = vmul.f32 %v1692_v5, %v2002_v41  ;;  %v1271_v41 = vld [vmem:[%s2190_s15 + $0x10] sm:$0xff] (%p1894_p10)  ;;  %1276 = vst [vmem:[%s2269_s29 + $0x40] sm:$0xff] (%p1894_p10), %v1275_v51 }
 0x237   : > { %v1696_v13 = vpop.eup %1695  ;;  %1238 = vst [vmem:[%s2190_s15 + $0xb8] sm:$0xff] %v1210_v50  ;;  %v1213_v9 = vmul.f32 %v1694_v22, %v2011_v45  ;;  %1249 = sbr.rel (!%p1894_p10) target bundleno = 580 (0x244), region = 98  ;;  %v1273_v45 = vld [vmem:[%s2190_s15 + $0x18] sm:$0xff] (%p1894_p10)  ;;  %1272 = vst [vmem:[%s2269_s29 + $0x10] sm:$0xff] (%p1894_p10), %v1271_v41  ;;  %v1299_v63 = vld [vmem:[%s2190_s15 + $0x80] sm:$0xff] (%p1894_p10) }
 0x238   : > { %v1698_v57 = vpop.eup %1697  ;;  %1239 = vst [vmem:[%s2190_s15 + $0xc0] sm:$0xf] %v1211_v55  ;;  %v1212_v14 = vmul.f32 %v1696_v13, %v1996_v39  ;;  %v1267_v39 = vld [vmem:[%s2190_s15] sm:$0xff] (%p1894_p10)  ;;  %1274 = vst [vmem:[%s2269_s29 + $0x18] sm:$0xff] (%p1894_p10), %v1273_v45  ;;  %v1303_v28 = vld [vmem:[%s2190_s15 + $0x90] sm:$0xff] (%p1894_p10) }
 0x239   : > { %1241 = vst [vmem:[%s2190_s15 + $0xd0] sm:$0xf] %v1213_v9  ;;  %v1214_v47 = vmul.f32 %v1698_v57, %v1999_v40  ;;  %v1269_v40 = vld [vmem:[%s2190_s15 + $0x8] sm:$0xff] (%p1894_p10)  ;;  %1268 = vst [vmem:[%s2269_s29] sm:$0xff] (%p1894_p10), %v1267_v39 }
 0x23a   : > { %1240 = vst [vmem:[%s2190_s15 + $0xc8] sm:$0xf] %v1212_v14  ;;  %1270 = vst [vmem:[%s2269_s29 + $0x8] sm:$0xff] (%p1894_p10), %v1269_v40  ;;  %v1301_v30 = vld [vmem:[%s2190_s15 + $0x88] sm:$0xff] (%p1894_p10)  ;;  %v1305_v29 = vld [vmem:[%s2190_s15 + $0x98] sm:$0xff] (%p1894_p10) }
 0x23b   : > { %1242 = vst [vmem:[%s2190_s15 + $0xd8] sm:$0xf] %v1214_v47  ;;  %1300 = vst [vmem:[%s2269_s29 + $0x100] sm:$0xff] (%p1894_p10), %v1299_v63  ;;  %v1307_v4 = vld [vmem:[%s2190_s15 + $0xa0] sm:$0xff] (%p1894_p10) }
 0x23c   : > { %1302 = vst [vmem:[%s2269_s29 + $0x108] sm:$0xff] %v1301_v30  ;;  %1304 = vst [vmem:[%s2269_s29 + $0x110] sm:$0xff] %v1303_v28  ;;  %v1311_v33 = vld [vmem:[%s2190_s15 + $0xb0] sm:$0xff] }
 0x23d   : > { %1306 = vst [vmem:[%s2269_s29 + $0x118] sm:$0xff] %v1305_v29  ;;  %1308 = vst [vmem:[%s2269_s29 + $0x140] sm:$0xff] %v1307_v4  ;;  %v1309_v32 = vld [vmem:[%s2190_s15 + $0xa8] sm:$0xff] }
 0x23e   : > { %v1313_v23 = vld [vmem:[%s2190_s15 + $0xb8] sm:$0xff]  ;;  %1310 = vst [vmem:[%s2269_s29 + $0x148] sm:$0xff] %v1309_v32  ;;  %1312 = vst [vmem:[%s2269_s29 + $0x150] sm:$0xff] %v1311_v33 }
 0x23f   : > { %1314 = vst [vmem:[%s2269_s29 + $0x158] sm:$0xff] %v1313_v23  ;;  %v1315_v7 = vld [vmem:[%s2190_s15 + $0xc0] sm:$0xff] }
 0x240   : > { %v1319_v31 = vld [vmem:[%s2190_s15 + $0xd0] sm:$0xff]  ;;  %1316 = vst [vmem:[%s2269_s29 + $0x180] sm:$0xff] %v1315_v7 }
 0x241   : > { %v1317_v34 = vld [vmem:[%s2190_s15 + $0xc8] sm:$0xff]  ;;  %1320 = vst [vmem:[%s2269_s29 + $0x190] sm:$0xff] %v1319_v31 }
 0x242   : > { %1318 = vst [vmem:[%s2269_s29 + $0x188] sm:$0xff] %v1317_v34  ;;  %v1321_v62 = vld [vmem:[%s2190_s15 + $0xd8] sm:$0xff] }
 0x243   : > { %1322 = vst [vmem:[%s2269_s29 + $0x198] sm:$0xff] %v1321_v62 }
 0x244 PF: > { %s17_s9 = sadd.s32 1, %s1769_s9   ;;  %s2357_s23 = sld [smem:[#allocation5_spill]] }
 0x245   : > { %p14_p2 = scmp.ge.s32.totalorder %s17_s9, 6   ;;  %s2358_s10 = sld [smem:[#allocation6_spill]] }
 0x246   : > { %s2359_s24 = smov %s1741_s25  ;;  %s2360_s25 = smov %s1881_s17 }
 0x247   : > { %s2361_s26 = smov %s1749_s27  ;;  %s2362_s27 = smov %s1899_s22 }
 0x248   : > { %s2363_s28 = smov %s1761_s30  ;;  %s2364_s29 = smov %s1765_s8 }
 0x249   :  { %16 = sbr.rel (!%p14_p2) target bundleno = 5 (0x5), region = 163 }
 0x24a   : > { %s2365_s30 = smov %s2357_s23 }
 0x24b   : > { %s2366_s8 = smov %s2358_s10 }

</bundles_post_ra>
